<compile_context>
chip_gen: v7x
topology: tpu7x:2x2x1
jax: 0.10.0
libtpu: 0.0.40
codegen_flags: <defaults>
</compile_context>

<pallas_src>
import jax
import jax.numpy as jnp
from jax import lax
from jax.experimental import pallas as pl
from jax.experimental.pallas import tpu as pltpu

_BN_EPS = 1e-5
_LANE = 128
_SUBLANE = 8


def _round_up(x, m):
    return (x + m - 1) // m * m


def _kernel(a_ref, v_ref,
            w1a_ref, w1v_ref, b1_ref,
            w2_ref, b2_ref,
            w34_ref, b34_ref,
            out_ref):
    # First layer: concat(mean_T(audio), mean_T(video)) @ W1 with BN/mean folded in.
    # Two lane-dense (B, T*D) bf16 matmuls against the T-replicated, (1/T)-scaled
    # weights; f32 accumulation on the MXU.
    h1 = jnp.dot(a_ref[...], w1a_ref[...], preferred_element_type=jnp.float32)
    h1 = h1 + jnp.dot(v_ref[...], w1v_ref[...], preferred_element_type=jnp.float32)
    h1 = jnp.maximum(h1 + b1_ref[...], 0.0)        # bias + ReLU in f32 (v5e: no bf16 VPU)

    # Linear(512, 256) with folded BatchNorm1d(256), then ReLU.  Dropout = identity.
    h2 = jnp.maximum(
        jnp.dot(h1, w2_ref[...], preferred_element_type=jnp.float32) + b2_ref[...], 0.0)

    # Fused outputLayer: Linear(256,128) . Linear(128,nc) == Linear(256, nc_pad).
    out_ref[...] = (
        jnp.dot(h2, w34_ref[...], preferred_element_type=jnp.float32) + b34_ref[...])


def _fold_params(params, ta, tv, stream_dtype=jnp.bfloat16):
    """Fold eval-mode BN and the 1/T mean into the weights; fuse W3*W4; pad lanes."""
    s1 = params["g1"] * lax.rsqrt(params["var1"] + _BN_EPS)     # (1, 512)
    s2 = params["g2"] * lax.rsqrt(params["var2"] + _BN_EPS)     # (1, 256)

    # Temporal mean folded into row-replicated first-layer weights:
    #   (B, T*D) @ tile(W * s1 / T, (T, 1)) == mean_T(feat) @ (W * s1)
    w1a = jnp.tile(params["w1a"] * (s1 / ta), (ta, 1))          # (Ta*Da, 512)
    w1v = jnp.tile(params["w1v"] * (s1 / tv), (tv, 1))          # (Tv*Dv, 512)
    b1 = (params["b1"] - params["m1"]) * s1 + params["be1"]
    w2 = params["w2"] * s2
    b2 = (params["b2"] - params["m2"]) * s2 + params["be2"]

    # Fuse Linear(256,128) -> Linear(128,nc); pad classes to a lane-dense 128 multiple.
    nc = params["w4"].shape[1]
    nc_pad = _round_up(nc, _LANE)
    w4 = jnp.pad(params["w4"], ((0, 0), (0, nc_pad - nc)))
    b4 = jnp.pad(params["b4"], ((0, 0), (0, nc_pad - nc)))
    w34 = params["w3"] @ w4                                      # (256, nc_pad)
    b34 = params["b3"] @ w4 + b4                                 # (1, nc_pad)

    # Big first-layer weights stream as bf16 (MXU fast path, matches bf16 features);
    # small deeper-layer weights and all biases stay f32 for accuracy.
    return (w1a.astype(stream_dtype), w1v.astype(stream_dtype), b1,
            w2, b2, w34, b34)


def _vmem_capacity_bytes():
    """Per-TensorCore VMEM capacity; conservative 64 MiB (v7x) fallback."""
    try:
        cap = int(getattr(pltpu.get_tpu_info(), "vmem_capacity_bytes", 0))
        if cap > 0:
            return cap
    except Exception:
        pass
    return 64 * 1024 * 1024


def _choose_tile_b(batch, feat_row_bytes, vmem_capacity):
    """Batch tile: fits ~35% of VMEM for the double-buffered feature tiles, minimizes
    batch-padding waste, and prefers an even number (>=2) of grid steps so both v7x
    TensorCores get work on the "parallel" batch axis."""
    feat_budget = int(vmem_capacity * 0.35)
    tile_cap = (feat_budget // max(2 * feat_row_bytes, 1)) // _SUBLANE * _SUBLANE
    tile_cap = int(max(_SUBLANE, min(512, tile_cap)))
    if batch <= tile_cap:
        n_steps = 2 if batch >= 2 * _SUBLANE else 1
    else:
        n_steps = pl.cdiv(batch, tile_cap)
        n_steps += n_steps % 2          # even split across the 2 v7x TensorCores
    return int(_round_up(pl.cdiv(batch, n_steps), _SUBLANE))


def mean_concat_dense_early(audio_feat, video_feat, params):
    """Forward pass of MeanConcatDenseEarly (inference/eval mode) as one Pallas kernel."""
    batch, ta, da = audio_feat.shape
    _, tv, dv = video_feat.shape
    num_classes = params["w4"].shape[1]
    nc_pad = _round_up(num_classes, _LANE)

    # Lane-dense bf16 feature slabs: (B, T, D) -> (B, T*D), contiguous reshape.
    a2d = audio_feat.astype(jnp.bfloat16).reshape(batch, ta * da)
    v2d = video_feat.astype(jnp.bfloat16).reshape(batch, tv * dv)

    # Per-batch-row VMEM bytes of the two feature tiles (lane-padded, bf16).
    feat_row_bytes = 2 * (_round_up(ta * da, _LANE) + _round_up(tv * dv, _LANE))
    vmem_cap = _vmem_capacity_bytes()
    tile_b = _choose_tile_b(batch, feat_row_bytes, vmem_cap)

    b_pad = _round_up(batch, tile_b)
    if b_pad != batch:
        a2d = jnp.pad(a2d, ((0, b_pad - batch), (0, 0)))
        v2d = jnp.pad(v2d, ((0, b_pad - batch), (0, 0)))

    folded = _fold_params(params, ta, tv)

    # Feature tensors: tiled along batch, double-buffered by the pipeline.
    feat_specs = [
        pl.BlockSpec((tile_b, ta * da), lambda i: (i, 0)),
        pl.BlockSpec((tile_b, tv * dv), lambda i: (i, 0)),
    ]
    # Weights/biases: whole-array blocks with a grid-invariant index_map -> VMEM-resident.
    param_specs = [
        pl.BlockSpec(p.shape, lambda i, nd=p.ndim: (0,) * nd) for p in folded
    ]

    # Generation-aware scoped-VMEM limit: estimate, 2x headroom, <= 80% of capacity
    # (~51 MiB on v7x's 64 MiB part, ~102 MiB on 128 MiB v5e/v6e parts).
    param_bytes = sum(2 * int(p.size) * p.dtype.itemsize for p in folded)  # dbl-buffered
    feat_bytes = 2 * tile_b * feat_row_bytes                               # dbl-buffered
    out_bytes = 2 * tile_b * nc_pad * 4
    work_bytes = 4 * tile_b * (512 + 256 + nc_pad)                         # f32 h1/h2/out
    vmem_est = feat_bytes + out_bytes + param_bytes + work_bytes
    vmem_limit = int(min(int(0.8 * vmem_cap), max(2 * vmem_est, 32 * 1024 * 1024)))

    out_padded = pl.pallas_call(
        _kernel,
        out_shape=jax.ShapeDtypeStruct((b_pad, nc_pad), jnp.float32),
        grid=(b_pad // tile_b,),
        in_specs=feat_specs + param_specs,
        out_specs=pl.BlockSpec((tile_b, nc_pad), lambda i: (i, 0)),
        compiler_params=pltpu.CompilerParams(
            dimension_semantics=("parallel",),     # shards batch tiles across TCs on v7x
            vmem_limit_bytes=vmem_limit),
    )(a2d, v2d, *folded)

    return out_padded[:batch, :num_classes]


def init_params(key, audio_emb_dim, video_emb_dim, num_classes):
    """Deterministic parameter init (PyTorch-like uniform(+-1/sqrt(fan_in)))."""
    def lin(k, fan_in, fan_out):
        kw, kb = jax.random.split(k)
        bound = 1.0 / jnp.sqrt(fan_in)
        w = jax.random.uniform(kw, (fan_in, fan_out), jnp.float32, -bound, bound)
        b = jax.random.uniform(kb, (1, fan_out), jnp.float32, -bound, bound)
        return w, b

    k1, k2, k3, k4 = jax.random.split(key, 4)
    d_in = audio_emb_dim + video_emb_dim
    w1, b1 = lin(k1, d_in, 512)
    w2, b2 = lin(k2, 512, 256)
    w3, b3 = lin(k3, 256, 128)
    w4, b4 = lin(k4, 128, num_classes)

    def bn(n):  # PyTorch BatchNorm1d defaults: gamma=1, beta=0, mean=0, var=1
        return (jnp.ones((1, n), jnp.float32), jnp.zeros((1, n), jnp.float32),
                jnp.zeros((1, n), jnp.float32), jnp.ones((1, n), jnp.float32))

    g1, be1, m1, var1 = bn(512)
    g2, be2, m2, var2 = bn(256)

    return {
        # W1 split along its input dim: rows [0:Da] multiply audio, rows [Da:] video.
        "w1a": w1[:audio_emb_dim], "w1v": w1[audio_emb_dim:], "b1": b1,
        "g1": g1, "be1": be1, "m1": m1, "var1": var1,
        "w2": w2, "b2": b2, "g2": g2, "be2": be2, "m2": m2, "var2": var2,
        "w3": w3, "b3": b3,
        "w4": w4, "b4": b4,
    }


def _reference(audio_feat, video_feat, params):
    """Pure-JAX f32 reference of the PyTorch forward (eval mode), unfolded params."""
    a = audio_feat.mean(axis=1)
    v = video_feat.mean(axis=1)
    av = jnp.concatenate([a, v], axis=1)
    w1 = jnp.concatenate([params["w1a"], params["w1v"]], axis=0)
    z1 = av @ w1 + params["b1"]
    h1 = jnp.maximum(params["g1"] * (z1 - params["m1"]) / jnp.sqrt(params["var1"] + _BN_EPS)
                     + params["be1"], 0.0)
    z2 = h1 @ params["w2"] + params["b2"]
    h2 = jnp.maximum(params["g2"] * (z2 - params["m2"]) / jnp.sqrt(params["var2"] + _BN_EPS)
                     + params["be2"], 0.0)
    h3 = h2 @ params["w3"] + params["b3"]
    return h3 @ params["w4"] + params["b4"]


if __name__ == "__main__":
    B, Ta, Tv = 2, 8, 6
    audio_emb_dim, video_emb_dim, num_classes = 32, 48, 10

    key = jax.random.PRNGKey(0)
    ka, kv, kp = jax.random.split(key, 3)
    audio_feat = jax.random.normal(ka, (B, Ta, audio_emb_dim), jnp.float32)
    video_feat = jax.random.normal(kv, (B, Tv, video_emb_dim), jnp.float32)
    params = init_params(kp, audio_emb_dim, video_emb_dim, num_classes)

    out = mean_concat_dense_early(audio_feat, video_feat, params)
    out = jax.block_until_ready(out)

    ref = _reference(audio_feat, video_feat, params)
    assert out.shape == (B, num_classes)
    # Features/W1 stream as bf16 -> slightly relaxed tolerance vs the f32 reference.
    assert jnp.allclose(out, ref, atol=3e-2, rtol=3e-2), "kernel mismatch vs reference"
    print("KERNEL_OK")
</pallas_src>

<mosaic_0001>
module attributes {stable_mosaic.version = 11 : i64} {
  func.func @_kernel(%arg0: i32, %arg1: memref<8x256xbf16, #tpu.memory_space<vmem>>, %arg2: memref<8x288xbf16, #tpu.memory_space<vmem>>, %arg3: memref<256x512xbf16, #tpu.memory_space<vmem>>, %arg4: memref<288x512xbf16, #tpu.memory_space<vmem>>, %arg5: memref<1x512xf32, #tpu.memory_space<vmem>>, %arg6: memref<512x256xf32, #tpu.memory_space<vmem>>, %arg7: memref<1x256xf32, #tpu.memory_space<vmem>>, %arg8: memref<256x128xf32, #tpu.memory_space<vmem>>, %arg9: memref<1x128xf32, #tpu.memory_space<vmem>>, %arg10: memref<8x128xf32, #tpu.memory_space<vmem>>) attributes {dimension_semantics = [#tpu.dimension_semantics<parallel>], iteration_bounds = array<i64: 1>, scalar_prefetch = 0 : i64, scratch_operands = 0 : i64, tpu.core_type = #tpu.core_type<tc>, window_params = [{transform_indices = @transform_0, window_bounds = array<i64: 8, 256>}, {transform_indices = @transform_1, window_bounds = array<i64: 8, 288>}, {pipeline_mode = #tpu.pipeline_mode<synchronous>, transform_indices = @transform_2, window_bounds = array<i64: 256, 512>}, {pipeline_mode = #tpu.pipeline_mode<synchronous>, transform_indices = @transform_3, window_bounds = array<i64: 288, 512>}, {pipeline_mode = #tpu.pipeline_mode<synchronous>, transform_indices = @transform_4, window_bounds = array<i64: 1, 512>}, {pipeline_mode = #tpu.pipeline_mode<synchronous>, transform_indices = @transform_5, window_bounds = array<i64: 512, 256>}, {pipeline_mode = #tpu.pipeline_mode<synchronous>, transform_indices = @transform_6, window_bounds = array<i64: 1, 256>}, {pipeline_mode = #tpu.pipeline_mode<synchronous>, transform_indices = @transform_7, window_bounds = array<i64: 256, 128>}, {pipeline_mode = #tpu.pipeline_mode<synchronous>, transform_indices = @transform_8, window_bounds = array<i64: 1, 128>}, {transform_indices = @transform_9, window_bounds = array<i64: 8, 128>}]} {
    %c0 = arith.constant 0 : index
    %c0_0 = arith.constant 0 : index
    %0 = vector.load %arg1[%c0, %c0_0] : memref<8x256xbf16, #tpu.memory_space<vmem>>, vector<8x256xbf16>
    %c0_1 = arith.constant 0 : index
    %c0_2 = arith.constant 0 : index
    %1 = vector.load %arg3[%c0_1, %c0_2] : memref<256x512xbf16, #tpu.memory_space<vmem>>, vector<256x512xbf16>
    %cst = arith.constant dense<0.000000e+00> : vector<8x512xf32>
    %2 = tpu.matmul %0, %1, %cst {dimension_numbers = #tpu.dot_dimension_numbers<[1], [0], [0], [1], [0, 0, 1, 1], [], []>} : vector<8x256xbf16>, vector<256x512xbf16>, vector<8x512xf32> -> vector<8x512xf32>
    %c0_3 = arith.constant 0 : index
    %c0_4 = arith.constant 0 : index
    %3 = vector.load %arg2[%c0_3, %c0_4] : memref<8x288xbf16, #tpu.memory_space<vmem>>, vector<8x288xbf16>
    %c0_5 = arith.constant 0 : index
    %c0_6 = arith.constant 0 : index
    %4 = vector.load %arg4[%c0_5, %c0_6] : memref<288x512xbf16, #tpu.memory_space<vmem>>, vector<288x512xbf16>
    %cst_7 = arith.constant dense<0.000000e+00> : vector<8x512xf32>
    %5 = tpu.matmul %3, %4, %cst_7 {dimension_numbers = #tpu.dot_dimension_numbers<[1], [0], [0], [1], [0, 0, 1, 1], [], []>} : vector<8x288xbf16>, vector<288x512xbf16>, vector<8x512xf32> -> vector<8x512xf32>
    %6 = arith.addf %2, %5 : vector<8x512xf32>
    %c0_8 = arith.constant 0 : index
    %c0_9 = arith.constant 0 : index
    %7 = vector.load %arg5[%c0_8, %c0_9] : memref<1x512xf32, #tpu.memory_space<vmem>>, vector<1x512xf32>
    %8 = vector.broadcast %7 : vector<1x512xf32> to vector<8x512xf32>
    %9 = arith.addf %6, %8 : vector<8x512xf32>
    %cst_10 = arith.constant 0.000000e+00 : f32
    %10 = vector.broadcast %cst_10 : f32 to vector<8x512xf32>
    %11 = arith.maximumf %9, %10 : vector<8x512xf32>
    %c0_11 = arith.constant 0 : index
    %c0_12 = arith.constant 0 : index
    %12 = vector.load %arg6[%c0_11, %c0_12] : memref<512x256xf32, #tpu.memory_space<vmem>>, vector<512x256xf32>
    %cst_13 = arith.constant dense<0.000000e+00> : vector<8x256xf32>
    %13 = tpu.matmul %11, %12, %cst_13 {dimension_numbers = #tpu.dot_dimension_numbers<[1], [0], [0], [1], [0, 0, 1, 1], [], []>} : vector<8x512xf32>, vector<512x256xf32>, vector<8x256xf32> -> vector<8x256xf32>
    %c0_14 = arith.constant 0 : index
    %c0_15 = arith.constant 0 : index
    %14 = vector.load %arg7[%c0_14, %c0_15] : memref<1x256xf32, #tpu.memory_space<vmem>>, vector<1x256xf32>
    %15 = vector.broadcast %14 : vector<1x256xf32> to vector<8x256xf32>
    %16 = arith.addf %13, %15 : vector<8x256xf32>
    %cst_16 = arith.constant 0.000000e+00 : f32
    %17 = vector.broadcast %cst_16 : f32 to vector<8x256xf32>
    %18 = arith.maximumf %16, %17 : vector<8x256xf32>
    %c0_17 = arith.constant 0 : index
    %c0_18 = arith.constant 0 : index
    %19 = vector.load %arg8[%c0_17, %c0_18] : memref<256x128xf32, #tpu.memory_space<vmem>>, vector<256x128xf32>
    %cst_19 = arith.constant dense<0.000000e+00> : vector<8x128xf32>
    %20 = tpu.matmul %18, %19, %cst_19 {dimension_numbers = #tpu.dot_dimension_numbers<[1], [0], [0], [1], [0, 0, 1, 1], [], []>} : vector<8x256xf32>, vector<256x128xf32>, vector<8x128xf32> -> vector<8x128xf32>
    %c0_20 = arith.constant 0 : index
    %c0_21 = arith.constant 0 : index
    %21 = vector.load %arg9[%c0_20, %c0_21] : memref<1x128xf32, #tpu.memory_space<vmem>>, vector<1x128xf32>
    %22 = vector.broadcast %21 : vector<1x128xf32> to vector<8x128xf32>
    %23 = arith.addf %20, %22 : vector<8x128xf32>
    %c0_22 = arith.constant 0 : index
    %c0_23 = arith.constant 0 : index
    %24 = vector.load %arg10[%c0_22, %c0_23] : memref<8x128xf32, #tpu.memory_space<vmem>>, vector<8x128xf32>
    tpu.vector_store %arg10[%c0_22, %c0_23], %23 {strides = array<i32>} : memref<8x128xf32, #tpu.memory_space<vmem>>, vector<8x128xf32>,
    return
  }
  func.func @transform_0(%arg0: i32) -> (i32, i32) {
    %c0_i32 = arith.constant 0 : i32
    %c0_i32_0 = arith.constant 0 : i32
    return %arg0, %c0_i32 : i32, i32
  }
  func.func @transform_1(%arg0: i32) -> (i32, i32) {
    %c0_i32 = arith.constant 0 : i32
    %c0_i32_0 = arith.constant 0 : i32
    return %arg0, %c0_i32 : i32, i32
  }
  func.func @transform_2(%arg0: i32) -> (i32, i32) {
    %c0_i32 = arith.constant 0 : i32
    %c0_i32_0 = arith.constant 0 : i32
    %c0_i32_1 = arith.constant 0 : i32
    return %c0_i32, %c0_i32_0 : i32, i32
  }
  func.func @transform_3(%arg0: i32) -> (i32, i32) {
    %c0_i32 = arith.constant 0 : i32
    %c0_i32_0 = arith.constant 0 : i32
    %c0_i32_1 = arith.constant 0 : i32
    return %c0_i32, %c0_i32_0 : i32, i32
  }
  func.func @transform_4(%arg0: i32) -> (i32, i32) {
    %c0_i32 = arith.constant 0 : i32
    %c0_i32_0 = arith.constant 0 : i32
    %c0_i32_1 = arith.constant 0 : i32
    return %c0_i32, %c0_i32_0 : i32, i32
  }
  func.func @transform_5(%arg0: i32) -> (i32, i32) {
    %c0_i32 = arith.constant 0 : i32
    %c0_i32_0 = arith.constant 0 : i32
    %c0_i32_1 = arith.constant 0 : i32
    return %c0_i32, %c0_i32_0 : i32, i32
  }
  func.func @transform_6(%arg0: i32) -> (i32, i32) {
    %c0_i32 = arith.constant 0 : i32
    %c0_i32_0 = arith.constant 0 : i32
    %c0_i32_1 = arith.constant 0 : i32
    return %c0_i32, %c0_i32_0 : i32, i32
  }
  func.func @transform_7(%arg0: i32) -> (i32, i32) {
    %c0_i32 = arith.constant 0 : i32
    %c0_i32_0 = arith.constant 0 : i32
    %c0_i32_1 = arith.constant 0 : i32
    return %c0_i32, %c0_i32_0 : i32, i32
  }
  func.func @transform_8(%arg0: i32) -> (i32, i32) {
    %c0_i32 = arith.constant 0 : i32
    %c0_i32_0 = arith.constant 0 : i32
    %c0_i32_1 = arith.constant 0 : i32
    return %c0_i32, %c0_i32_0 : i32, i32
  }
  func.func @transform_9(%arg0: i32) -> (i32, i32) {
    %c0_i32 = arith.constant 0 : i32
    %c0_i32_0 = arith.constant 0 : i32
    return %arg0, %c0_i32 : i32, i32
  }
}

</mosaic_0001>

<bundles_post_ra>
// kernel: tpu_custom_call.1
= control target key start
LH: loop header
LB: loop body
LE: loop exit
PB: predicated region body
PF: predicated region fallthrough
CT: control target
= control target key end

     0   :  { %14 = vsyncpa [#allocation3], 0  ;;  %s2572_s0 = inlined_call_operand.hbm [shape: bf16[8,256], index: 0, kind: input, shape index: {}]   ;;  %s2573_s1 = inlined_call_operand.hbm [shape: bf16[8,288], index: 1, kind: input, shape index: {}]   ;;  %s2574_s2 = inlined_call_operand.hbm [shape: bf16[256,512], index: 2, kind: input, shape index: {}]   ;;  %s2575_s3 = inlined_call_operand.hbm [shape: bf16[288,512], index: 3, kind: input, shape index: {}]   ;;  %s2576_s4 = inlined_call_operand.vmem [shape: f32[1,512], index: 4, kind: input, shape index: {}]   ;;  %s2577_s5 = inlined_call_operand.hbm [shape: f32[512,256], index: 5, kind: input, shape index: {}]   ;;  %s2578_s6 = inlined_call_operand.vmem [shape: f32[1,256], index: 6, kind: input, shape index: {}]   ;;  %s2579_s7 = inlined_call_operand.hbm [shape: f32[256,128], index: 7, kind: input, shape index: {}]   ;;  %s2580_s8 = inlined_call_operand.vmem [shape: f32[1,128], index: 8, kind: input, shape index: {}]   ;;  %s2581_s9 = inlined_call_operand.hbm [shape: f32[8,128], index: 9, kind: output, shape index: {}]  }
   0x1   :  { %15 = vsyncpa [#allocation6], 0 }
   0x2   :  { %16 = vsyncpa [#allocation9], 0 }
   0x3   :  { %17 = vsyncpa [#allocation12], 0 }
   0x4   :  { %18 = vsyncpa [#allocation4], 0  ;;  %s2368_s30 = smov [#allocation5]   ;;  %s2204_s13 = scalar_lea.hbm %s2573_s1, 192 }
   0x5   :  { %s35_s10 = sshll.u32 %s2368_s30, 4  ;;  %p2205_p0 = scmp.ne.s32.totalorder %s2573_s1, %s2204_s13  ;;  %s36_s10 = int_to_ptr.vmem [resolvable:$true] %s35_s10 }
   0x6   :  { %p2208_p1 = scmp.lt.u32.totalorder %s2204_s13, %s2573_s1 }
   0x8   :  { %p2210_p2 = pnand %p2208_p1, %p2205_p0 }
   0xa   :  { %2213 = shalt.err (!%p2210_p2)
}
   0xb   :  { %s2214_s18 = scalar_lea.vmem %s36_s10, 192  ;;  %p2219_p4 = scmp.lt.s32.totalorder %s36_s10, %s36_s10 }
   0xc   :  { %p2215_p3 = scmp.ne.s32.totalorder %s36_s10, %s2214_s18  ;;  %p2220_p5 = scmp.lt.s32.totalorder %s2214_s18, %s2214_s18 }
   0xe   :  { %p2221_p6 = por %p2220_p5, %p2219_p4 }
  0x10   :  { %p2222_p7 = pnand %p2221_p6, %p2215_p3 }
  0x12   :  { %2225 = shalt.err (!%p2222_p7)
}
  0x13   :  { %38 = dma.hbm_to_vmem [thread:$0]  %s2573_s1, 192, %s36_s10, [#allocation6]  }
  0x14   :  { %s2369_s21 = smov [#allocation8]   ;;  %s2370_s23 = smov [#allocation2]  }
  0x15   :  { %s56_s22 = sshll.u32 %s2369_s21, 4  ;;  %s25_s24 = sshll.u32 %s2370_s23, 4  ;;  %s57_s22 = int_to_ptr.vmem [resolvable:$true] %s56_s22  ;;  %s26_s24 = int_to_ptr.vmem [resolvable:$true] %s25_s24 }
  0x16   :  { %s2226_s27 = scalar_lea.hbm %s2575_s3, 9216 }
  0x17   :  { %p2227_p8 = scmp.ne.s32.totalorder %s2575_s3, %s2226_s27  ;;  %p2230_p9 = scmp.lt.u32.totalorder %s2226_s27, %s2575_s3 }
  0x19   :  { %p2232_p10 = pnand %p2230_p9, %p2227_p8 }
  0x1b   :  { %2235 = shalt.err (!%p2232_p10)
}
  0x1c   :  { %s2236_s1 = scalar_lea.vmem %s57_s22, 9216  ;;  %p2241_p12 = scmp.lt.s32.totalorder %s57_s22, %s57_s22 }
  0x1d   :  { %p2237_p11 = scmp.ne.s32.totalorder %s57_s22, %s2236_s1  ;;  %p2242_p13 = scmp.lt.s32.totalorder %s2236_s1, %s2236_s1 }
  0x1f   :  { %p2243_p0 = por %p2242_p13, %p2241_p12 }
  0x21   :  { %p2244_p1 = pnand %p2243_p0, %p2237_p11 }
  0x23   :  { %2247 = shalt.err (!%p2244_p1)
}
  0x24   :  { %s2371_s10 = smov 256   ;;  %s2372_s12 = smov 16  }
  0x25   :  { %62 = dma.hbm_to_vmem [thread:$0]  %s2575_s3, 9216, %s57_s22, [#allocation9], %s2371_s10, %s2371_s10, %s2372_s12  }
  0x26   :  { %s2248_s17 = scalar_lea.hbm %s2572_s0, 128 }
  0x27   :  { %p2249_p2 = scmp.ne.s32.totalorder %s2572_s0, %s2248_s17  ;;  %p2252_p3 = scmp.lt.u32.totalorder %s2248_s17, %s2572_s0 }
  0x29   :  { %p2254_p4 = pnand %p2252_p3, %p2249_p2 }
  0x2b   :  { %2257 = shalt.err (!%p2254_p4)
}
  0x2c   :  { %s2258_s23 = scalar_lea.vmem %s26_s24, 128  ;;  %p2263_p6 = scmp.lt.s32.totalorder %s26_s24, %s26_s24 }
  0x2d   :  { %p2259_p5 = scmp.ne.s32.totalorder %s26_s24, %s2258_s23  ;;  %p2264_p7 = scmp.lt.s32.totalorder %s2258_s23, %s2258_s23 }
  0x2f   :  { %p2265_p8 = por %p2264_p7, %p2263_p6 }
  0x31   :  { %p2266_p9 = pnand %p2265_p8, %p2259_p5 }
  0x33   :  { %2269 = shalt.err (!%p2266_p9)
}
  0x34   :  { %28 = dma.hbm_to_vmem [thread:$0]  %s2572_s0, 128, %s26_s24, [#allocation3]  }
  0x35   :  { %s2373_s25 = smov [#allocation7]   ;;  %s2374_s27 = smov [#allocation10]  }
  0x36   :  { %s44_s26 = sshll.u32 %s2373_s25, 4  ;;  %s70_s28 = sshll.u32 %s2374_s27, 4  ;;  %s45_s26 = int_to_ptr.vmem [resolvable:$true] %s44_s26  ;;  %s71_s28 = int_to_ptr.vmem [resolvable:$true] %s70_s28 }
  0x37   :  { %s2270_s11 = scalar_lea.hbm %s2574_s2, 8192 }
  0x38   :  { %p2271_p10 = scmp.ne.s32.totalorder %s2574_s2, %s2270_s11  ;;  %p2274_p11 = scmp.lt.u32.totalorder %s2270_s11, %s2574_s2 }
  0x3a   :  { %p2276_p12 = pnand %p2274_p11, %p2271_p10 }
  0x3c   :  { %2279 = shalt.err (!%p2276_p12)
}
  0x3d   :  { %s2280_s0 = scalar_lea.vmem %s45_s26, 8192  ;;  %p2285_p0 = scmp.lt.s32.totalorder %s45_s26, %s45_s26 }
  0x3e   :  { %p2281_p13 = scmp.ne.s32.totalorder %s45_s26, %s2280_s0  ;;  %p2286_p1 = scmp.lt.s32.totalorder %s2280_s0, %s2280_s0 }
  0x40   :  { %p2287_p2 = por %p2286_p1, %p2285_p0 }
  0x42   :  { %p2288_p3 = pnand %p2287_p2, %p2281_p13 }
  0x44   :  { %2291 = shalt.err (!%p2288_p3)
}
  0x45   :  { %50 = dma.hbm_to_vmem [thread:$0]  %s2574_s2, 8192, %s45_s26, [#allocation6], %s2371_s10, %s2371_s10, %s2372_s12  }
  0x46   :  { %s2292_s19 = scalar_lea.hbm %s2577_s5, 16384 }
  0x47   :  { %p2293_p4 = scmp.ne.s32.totalorder %s2577_s5, %s2292_s19  ;;  %p2296_p5 = scmp.lt.u32.totalorder %s2292_s19, %s2577_s5 }
  0x49   :  { %p2298_p6 = pnand %p2296_p5, %p2293_p4 }
  0x4b   :  { %2301 = shalt.err (!%p2298_p6)
}
  0x4c   :  { %s2302_s22 = scalar_lea.vmem %s71_s28, 16384  ;;  %p2307_p8 = scmp.lt.s32.totalorder %s71_s28, %s71_s28 }
  0x4d   :  { %p2303_p7 = scmp.ne.s32.totalorder %s71_s28, %s2302_s22  ;;  %p2308_p9 = scmp.lt.s32.totalorder %s2302_s22, %s2302_s22 }
  0x4f   :  { %p2309_p10 = por %p2308_p9, %p2307_p8 }
  0x51   :  { %p2310_p11 = pnand %p2309_p10, %p2303_p7 }
  0x53   :  { %2313 = shalt.err (!%p2310_p11)
}
  0x54   :  { %76 = dma.hbm_to_vmem [thread:$0]  %s2577_s5, 16384, %s71_s28, [#allocation9], %s2371_s10, %s2371_s10, %s2372_s12  }
  0x55   :  { %s2375_s26 = smov [#allocation11]   ;;  %s2314_s11 = scalar_lea.hbm %s2579_s7, 4096 }
  0x56   :  { %s84_s27 = sshll.u32 %s2375_s26, 4  ;;  %p2315_p12 = scmp.ne.s32.totalorder %s2579_s7, %s2314_s11  ;;  %s85_s27 = int_to_ptr.vmem [resolvable:$true] %s84_s27 }
  0x57   :  { %p2318_p13 = scmp.lt.u32.totalorder %s2314_s11, %s2579_s7 }
  0x59   :  { %p2320_p0 = pnand %p2318_p13, %p2315_p12 }
  0x5b   :  { %2323 = shalt.err (!%p2320_p0)
}
  0x5c   :  { %s2324_s0 = scalar_lea.vmem %s85_s27, 4096  ;;  %p2329_p2 = scmp.lt.s32.totalorder %s85_s27, %s85_s27 }
  0x5d   :  { %p2325_p1 = scmp.ne.s32.totalorder %s85_s27, %s2324_s0  ;;  %p2330_p3 = scmp.lt.s32.totalorder %s2324_s0, %s2324_s0 }
  0x5f   :  { %p2331_p4 = por %p2330_p3, %p2329_p2 }
  0x61   :  { %p2332_p5 = pnand %p2331_p4, %p2325_p1 }
  0x63   :  { %2335 = shalt.err (!%p2332_p5)
}
  0x64   :  { %s2376_s5 = smov 128   ;;  %s2377_s10 = smov 8  }
  0x65   :  { %90 = dma.hbm_to_vmem [thread:$0]  %s2579_s7, 4096, %s85_s27, [#allocation12], %s2376_s5, %s2376_s5, %s2377_s10  }
  0x66   :  { %2358 = dma.done.wait [#allocation3], 128  }
  0x67   :  { %2359 = vsyncadd [#allocation3], 4294967168 }
  0x68   :  { %2360 = dma.done.wait [#allocation6], 8384  }
  0x69   :  { %2361 = vsyncadd [#allocation6], 4294958912 }
  0x6a   :  { %2362 = dma.done.wait [#allocation9], 25600  }
  0x6b   :  { %2363 = vsyncadd [#allocation9], 4294941696 }
  0x6c   :  { %2364 = dma.done.wait [#allocation12], 4096  }
  0x6d   :  { %2365 = vsyncadd [#allocation12], 4294963200  ;;  %v2378_v0 = vmov 0   ;;  %v1995_v1 = vld [vmem:[#allocation8 + $0x4] ss:$16 sps:$4 sm:$0xff]   ;;  %vm621_vm0 = vcmask 261120  }
  0x6e   :  { %698 = vmatprep.mubr.bf16.mxu0 %v2378_v0  ;;  %v1997_v2 = vld [vmem:[#allocation8 + $0x204] ss:$16 sps:$4 sm:$0xff]   ;;  %625 = vmatprep.subr.bf16.mxu1 %v1995_v1  ;;  %v1999_v3 = vld [vmem:[#allocation8] ss:$16 sps:$4 sm:$0xff]   ;;  %v2009_v10 = vld [vmem:[#allocation8 + $0x208] ss:$16 sps:$4 sm:$0xff]  }
  0x6f   :  { %v2000_v4 = vld [vmem:[#allocation8 + $0x200] ss:$16 sps:$4 sm:$0xff]   ;;  %666 = vmatprep.subr.bf16.mxu0 %v1997_v2  ;;  %v2001_v5 = vld [vmem:[#allocation8 + $0x24] ss:$16 sps:$4 sm:$0xff]   ;;  %626 = vmatpush1.bf16.msra.mxu1 %v1999_v3  ;;  %v2011_v11 = vld [vmem:[#allocation8 + $0x20c] ss:$16 sps:$4 sm:$0xff]  }
  0x70   :  { %667 = vmatpush1.bf16.msra.mxu0 %v2000_v4  ;;  %v2003_v6 = vld [vmem:[#allocation8 + $0x224] ss:$16 sps:$4 sm:$0xff]   ;;  %v2005_v7 = vld [vmem:[#allocation8 + $0x20] ss:$16 sps:$4 sm:$0xff]   ;;  %627 = vmatprep.subr.bf16.mxu1 %v2001_v5  ;;  %v2013_v13 = vld [vmem:[#allocation5 + $0x8] ss:$0 sps:$4 sm:$0xff]  }
  0x71   :  { %v2006_v8 = vld [vmem:[#allocation8 + $0x220] ss:$16 sps:$4 sm:$0xff]   ;;  %668 = vmatprep.subr.bf16.mxu0 %v2003_v6  ;;  %v2007_v9 = vld [vmem:[#allocation8 + $0x44] ss:$16 sps:$4 sm:$0xff]   ;;  %v2018_v15 = vld [vmem:[#allocation8 + $0x22c] ss:$16 sps:$4 sm:$0xff]  }
  0x72   :  { %v2012_v12 = vld [vmem:[#allocation8 + $0x40] ss:$16 sps:$4 sm:$0xff]   ;;  %v2014_v14 = vld [vmem:[#allocation8 + $0x64] ss:$16 sps:$4 sm:$0xff]   ;;  %v2016_v16 = vld [vmem:[#allocation8 + $0x228] ss:$16 sps:$4 sm:$0xff]  }
  0x73   :  { %628 = vmatpush1.bf16.msra.mxu1 %v2005_v7  ;;  %v2019_v17 = vld [vmem:[#allocation8 + $0x60] ss:$16 sps:$4 sm:$0xff]   ;;  %v2020_v18 = vld [vmem:[#allocation8 + $0x84] ss:$16 sps:$4 sm:$0xff]   ;;  %v2096_v6 = vld [vmem:[#allocation8 + $0xc] ss:$16 sps:$4 sm:$0xff]  }
  0x74   :  { %669 = vmatpush1.bf16.msra.mxu0 %v2006_v8  ;;  %629 = vmatprep.subr.bf16.mxu1 %v2007_v9  ;;  %v2024_v19 = vld [vmem:[#allocation7 + $0x4] ss:$16 sps:$4 sm:$0xff]   ;;  %v2022_v20 = vld [vmem:[#allocation7] ss:$16 sps:$4 sm:$0xff]   ;;  %v2094_v9 = vld [vmem:[#allocation8 + $0x8] ss:$16 sps:$4 sm:$0xff]  }
  0x75   :  { %748 = vmatprep.subr.bf16.mxu0 %v2011_v11  ;;  %v2025_v21 = vld [vmem:[#allocation8 + $0x80] ss:$16 sps:$4 sm:$0xff]   ;;  %v2026_v22 = vld [vmem:[#allocation8 + $0xa4] ss:$16 sps:$4 sm:$0xff]   ;;  %v2102_v11 = vld [vmem:[#allocation8 + $0x2c] ss:$16 sps:$4 sm:$0xff]  }
  0x76   :  { %v2030_v23 = vld [vmem:[#allocation7 + $0x24] ss:$16 sps:$4 sm:$0xff]   ;;  %v2028_v24 = vld [vmem:[#allocation7 + $0x20] ss:$16 sps:$4 sm:$0xff]  }
  0x77   :  { %1715 = vmatmul.mubr.msk.bf16.vlgmr.msra.gmra.mrb[0].mxu0 %vm621_vm0, %v2013_v13  ;;  %630 = vmatpush1.bf16.msra.mxu1 %v2012_v12  ;;  %v2031_v25 = vld [vmem:[#allocation8 + $0xa0] ss:$16 sps:$4 sm:$0xff]   ;;  %v2032_v26 = vld [vmem:[#allocation8 + $0xc4] ss:$16 sps:$4 sm:$0xff]  }
  0x78   :  { %749 = vmatpush1.bf16.msra.mxu0 %v2009_v10  ;;  %631 = vmatprep.subr.bf16.mxu1 %v2014_v14  ;;  %v2036_v27 = vld [vmem:[#allocation7 + $0x44] ss:$16 sps:$4 sm:$0xff]   ;;  %v2034_v28 = vld [vmem:[#allocation7 + $0x40] ss:$16 sps:$4 sm:$0xff]  }
  0x79   :  { %750 = vmatprep.subr.bf16.mxu0 %v2018_v15  ;;  %780 = vmatprep.mubr.bf16.mxu0 %v2378_v0  ;;  %v2037_v29 = vld [vmem:[#allocation8 + $0xc0] ss:$16 sps:$4 sm:$0xff]   ;;  %v2038_v30 = vld [vmem:[#allocation8 + $0xe4] ss:$16 sps:$4 sm:$0xff]   ;;  %v2108_v15 = vld [vmem:[#allocation8 + $0x4c] ss:$16 sps:$4 sm:$0xff]  }
  0x7a   :  { %v2042_v31 = vld [vmem:[#allocation7 + $0x64] ss:$16 sps:$4 sm:$0xff]   ;;  %v2040_v32 = vld [vmem:[#allocation7 + $0x60] ss:$16 sps:$4 sm:$0xff]  }
  0x7b   :  { %632 = vmatpush1.bf16.msra.mxu1 %v2019_v17  ;;  %v2043_v33 = vld [vmem:[#allocation8 + $0xe0] ss:$16 sps:$4 sm:$0xff]   ;;  %v2044_v34 = vld [vmem:[#allocation8 + $0x104] ss:$16 sps:$4 sm:$0xff]   ;;  %v2106_v17 = vld [vmem:[#allocation8 + $0x48] ss:$16 sps:$4 sm:$0xff]  }
  0x7c   :  { %751 = vmatpush1.bf16.msra.mxu0 %v2016_v16  ;;  %633 = vmatprep.subr.bf16.mxu1 %v2020_v18  ;;  %v2048_v35 = vld [vmem:[#allocation7 + $0x84] ss:$16 sps:$4 sm:$0xff]   ;;  %v2046_v36 = vld [vmem:[#allocation7 + $0x80] ss:$16 sps:$4 sm:$0xff]  }
  0x7d   :  { %1116 = vmatprep.subr.bf16.mxu0 %v2024_v19  ;;  %v2049_v37 = vld [vmem:[#allocation8 + $0x100] ss:$16 sps:$4 sm:$0xff]   ;;  %v2050_v38 = vld [vmem:[#allocation8 + $0x124] ss:$16 sps:$4 sm:$0xff]   ;;  %v2114_v19 = vld [vmem:[#allocation8 + $0x6c] ss:$16 sps:$4 sm:$0xff]  }
  0x7e   :  { %v2054_v39 = vld [vmem:[#allocation7 + $0xa4] ss:$16 sps:$4 sm:$0xff]   ;;  %v2052_v40 = vld [vmem:[#allocation7 + $0xa0] ss:$16 sps:$4 sm:$0xff]  }
  0x7f   :  { %1716 = vmatmul.mubr.msk.bf16.vlgmr.msra.gmra.mrb[4].mxu0 %vm621_vm0, %v2013_v13  ;;  %634 = vmatpush1.bf16.msra.mxu1 %v2025_v21  ;;  %v2055_v41 = vld [vmem:[#allocation8 + $0x120] ss:$16 sps:$4 sm:$0xff]   ;;  %v2056_v42 = vld [vmem:[#allocation8 + $0x144] ss:$16 sps:$4 sm:$0xff]   ;;  %v2100_v13 = vld [vmem:[#allocation8 + $0x28] ss:$16 sps:$4 sm:$0xff]  }
  0x80   :  { %1117 = vmatpush1.bf16.msra.mxu0 %v2022_v20  ;;  %635 = vmatprep.subr.bf16.mxu1 %v2026_v22  ;;  %v2060_v43 = vld [vmem:[#allocation7 + $0xc4] ss:$16 sps:$4 sm:$0xff]   ;;  %v2058_v44 = vld [vmem:[#allocation7 + $0xc0] ss:$16 sps:$4 sm:$0xff]   ;;  %v2112_v21 = vld [vmem:[#allocation8 + $0x68] ss:$16 sps:$4 sm:$0xff]  }
  0x81   :  { %1118 = vmatprep.subr.bf16.mxu0 %v2030_v23  ;;  %v2061_v45 = vld [vmem:[#allocation8 + $0x140] ss:$16 sps:$4 sm:$0xff]   ;;  %v2062_v46 = vld [vmem:[#allocation8 + $0x164] ss:$16 sps:$4 sm:$0xff]   ;;  %v2122_v23 = vld [vmem:[#allocation8 + $0x8c] ss:$16 sps:$4 sm:$0xff]  }
  0x82   :  { %v2066_v47 = vld [vmem:[#allocation7 + $0xe4] ss:$16 sps:$4 sm:$0xff]   ;;  %v2064_v48 = vld [vmem:[#allocation7 + $0xe0] ss:$16 sps:$4 sm:$0xff]  }
  0x83   :  { %636 = vmatpush1.bf16.msra.mxu1 %v2031_v25  ;;  %v177_v49 = vld [vmem:[#allocation5] sm:$0xff]  ;;  %v2067_v50 = vld [vmem:[#allocation8 + $0x160] ss:$16 sps:$4 sm:$0xff]  }
  0x84   :  { %1119 = vmatpush1.bf16.msra.mxu0 %v2028_v24  ;;  %637 = vmatprep.subr.bf16.mxu1 %v2032_v26  ;;  %v2068_v51 = vld [vmem:[#allocation8 + $0x184] ss:$16 sps:$4 sm:$0xff]   ;;  %v1641_v52 = vcombine.high %v177_v49, %v177_v49  ;;  %v2070_v54 = vld [vmem:[#allocation7 + $0x100] ss:$16 sps:$4 sm:$0xff]   ;;  %v2516_v8 = vcombine.low %v177_v49, %v177_v49  ;;  %v2120_v25 = vld [vmem:[#allocation8 + $0x88] ss:$16 sps:$4 sm:$0xff]  }
  0x85   :  { %1120 = vmatprep.subr.bf16.mxu0 %v2036_v27  ;;  %v2072_v53 = vld [vmem:[#allocation7 + $0x104] ss:$16 sps:$4 sm:$0xff]   ;;  %v2073_v55 = vld [vmem:[#allocation8 + $0x180] ss:$16 sps:$4 sm:$0xff]   ;;  %v2125_v26 = vld [vmem:[#allocation8 + $0xac] ss:$16 sps:$4 sm:$0xff]  }
  0x86   :  { %657 = vmatprep.mubr.bf16.mxu1 %v1641_v52  ;;  %v2074_v56 = vld [vmem:[#allocation8 + $0x1a4] ss:$16 sps:$4 sm:$0xff]   ;;  %v2076_v58 = vld [vmem:[#allocation7 + $0x120] ss:$16 sps:$4 sm:$0xff]   ;;  %v2123_v27 = vld [vmem:[#allocation8 + $0xa8] ss:$16 sps:$4 sm:$0xff]  }
  0x87   :  { %638 = vmatpush1.bf16.msra.mxu1 %v2037_v29  ;;  %v2078_v57 = vld [vmem:[#allocation7 + $0x124] ss:$16 sps:$4 sm:$0xff]   ;;  %v2079_v59 = vld [vmem:[#allocation8 + $0x1a0] ss:$16 sps:$4 sm:$0xff]   ;;  %v2126_v29 = vld [vmem:[#allocation8 + $0xc8] ss:$16 sps:$4 sm:$0xff]  }
  0x88   :  { %1121 = vmatpush1.bf16.msra.mxu0 %v2034_v28  ;;  %639 = vmatprep.subr.bf16.mxu1 %v2038_v30  ;;  %v2080_v60 = vld [vmem:[#allocation8 + $0x1c4] ss:$16 sps:$4 sm:$0xff]   ;;  %v112_v62 = vld [vmem:[#allocation2] sm:$0xff] }
  0x89   :  { %1122 = vmatprep.subr.bf16.mxu0 %v2042_v31  ;;  %v2084_v61 = vld [vmem:[#allocation7 + $0x144] ss:$16 sps:$4 sm:$0xff]   ;;  %v2082_v63 = vld [vmem:[#allocation7 + $0x140] ss:$16 sps:$4 sm:$0xff]   ;;  %v2513_v1 = vcombine.high %v112_v62, %v112_v62  ;;  %v2519_v24 = vcombine.low %v112_v62, %v112_v62  ;;  %v2128_v28 = vld [vmem:[#allocation8 + $0xcc] ss:$16 sps:$4 sm:$0xff]  }
  0x8a   :  { %v2085_v0 = vld [vmem:[#allocation8 + $0x1c0] ss:$16 sps:$4 sm:$0xff]   ;;  %v2086_v2 = vld [vmem:[#allocation8 + $0x1e4] ss:$16 sps:$4 sm:$0xff]   ;;  %v2131_v30 = vld [vmem:[#allocation8 + $0xec] ss:$16 sps:$4 sm:$0xff]  }
  0x8b   :  { %640 = vmatpush1.bf16.msra.mxu1 %v2043_v33  ;;  %v2090_v3 = vld [vmem:[#allocation7 + $0x164] ss:$16 sps:$4 sm:$0xff]   ;;  %1148 = vmatprep.mubr.bf16.mxu0 %v2513_v1  ;;  %v2088_v4 = vld [vmem:[#allocation7 + $0x160] ss:$16 sps:$4 sm:$0xff]   ;;  %v2129_v31 = vld [vmem:[#allocation8 + $0xe8] ss:$16 sps:$4 sm:$0xff]  }
  0x8c   :  { %1123 = vmatpush1.bf16.msra.mxu0 %v2040_v32  ;;  %641 = vmatprep.subr.bf16.mxu1 %v2044_v34  ;;  %v2091_v5 = vld [vmem:[#allocation8 + $0x1e0] ss:$16 sps:$4 sm:$0xff]   ;;  %v2099_v7 = vld [vmem:[#allocation7 + $0x184] ss:$16 sps:$4 sm:$0xff]   ;;  %v2134_v32 = vld [vmem:[#allocation8 + $0x10c] ss:$16 sps:$4 sm:$0xff]  }
  0x8d   :  { %1124 = vmatprep.subr.bf16.mxu0 %v2048_v35  ;;  %v2097_v10 = vld [vmem:[#allocation7 + $0x180] ss:$16 sps:$4 sm:$0xff]   ;;  %v2105_v12 = vld [vmem:[#allocation7 + $0x1a4] ss:$16 sps:$4 sm:$0xff]   ;;  %v1229_v33 = vld [vmem:[#allocation10 + $0x8] sm:$0xff] }
  0x8e   :  { %v2103_v14 = vld [vmem:[#allocation7 + $0x1a0] ss:$16 sps:$4 sm:$0xff]   ;;  %v2111_v16 = vld [vmem:[#allocation7 + $0x1c4] ss:$16 sps:$4 sm:$0xff]   ;;  %v1231_v34 = vld [vmem:[#allocation10 + $0x18] sm:$0xff] }
  0x8f   :  { %642 = vmatpush1.bf16.msra.mxu1 %v2049_v37  ;;  %v2109_v18 = vld [vmem:[#allocation7 + $0x1c0] ss:$16 sps:$4 sm:$0xff]   ;;  %v2117_v20 = vld [vmem:[#allocation7 + $0x1e4] ss:$16 sps:$4 sm:$0xff]   ;;  %v2138_v62 = vld [vmem:[#allocation8 + $0x148] ss:$16 sps:$4 sm:$0xff]  }
  0x90   :  { %1125 = vmatpush1.bf16.msra.mxu0 %v2046_v36  ;;  %643 = vmatprep.subr.bf16.mxu1 %v2050_v38  ;;  %v2115_v22 = vld [vmem:[#allocation7 + $0x1e0] ss:$16 sps:$4 sm:$0xff]   ;;  %v1819_v36 = vpack.c.bf16 %v1231_v34, %v1229_v33  ;;  %v1233_v38 = vld [vmem:[#allocation10 + $0x28] sm:$0xff] }
  0x91   :  { %1126 = vmatprep.subr.bf16.mxu0 %v2054_v39  ;;  %v1228_v35 = vld [vmem:[#allocation10] sm:$0xff]  ;;  %v1230_v37 = vld [vmem:[#allocation10 + $0x10] sm:$0xff]  ;;  %v1235_v39 = vld [vmem:[#allocation10 + $0x38] sm:$0xff] }
  0x92   :  { %v2150_v33 = vld [vmem:[#allocation8 + $0x1c8] ss:$16 sps:$4 sm:$0xff]  }
  0x93   :  { %644 = vmatpush1.bf16.msra.mxu1 %v2055_v41  ;;  %v1823_v41 = vpack.c.bf16 %v1235_v39, %v1233_v38  ;;  %v1262_v38 = vld [vmem:[#allocation10 + $0x110] sm:$0xff]  ;;  %v1265_v39 = vld [vmem:[#allocation10 + $0x128] sm:$0xff] }
  0x94   :  { %1127 = vmatpush1.bf16.msra.mxu0 %v2052_v40  ;;  %645 = vmatprep.subr.bf16.mxu1 %v2056_v42  ;;  %v1821_v40 = vpack.c.bf16 %v1230_v37, %v1228_v35  ;;  %v1232_v42 = vld [vmem:[#allocation10 + $0x20] sm:$0xff]  ;;  %v2155_v35 = vld [vmem:[#allocation8 + $0x1ec] ss:$16 sps:$4 sm:$0xff]  }
  0x95   :  { %1128 = vmatprep.subr.bf16.mxu0 %v2060_v43  ;;  %v1234_v43 = vld [vmem:[#allocation10 + $0x30] sm:$0xff]  ;;  %v1260_v37 = vld [vmem:[#allocation10 + $0x100] sm:$0xff] }
  0x97   :  { %646 = vmatpush1.bf16.msra.mxu1 %v2061_v45  ;;  %v1239_v45 = vld [vmem:[#allocation10 + $0x58] sm:$0xff] }
  0x98   :  { %1129 = vmatpush1.bf16.msra.mxu0 %v2058_v44  ;;  %647 = vmatprep.subr.bf16.mxu1 %v2062_v46  ;;  %v1237_v44 = vld [vmem:[#allocation10 + $0x48] sm:$0xff] }
  0x99   :  { %1130 = vmatprep.subr.bf16.mxu0 %v2066_v47  ;;  %v2132_v46 = vld [vmem:[#allocation8 + $0x108] ss:$16 sps:$4 sm:$0xff]   ;;  %v1825_v47 = vpack.c.bf16 %v1234_v43, %v1232_v42  ;;  %v1827_v49 = vpack.c.bf16 %v1239_v45, %v1237_v44  ;;  %v1853_v42 = vpack.c.bf16 %v1262_v38, %v1260_v37  ;;  %v2158_v43 = vld [vmem:[#allocation7 + $0xc] ss:$16 sps:$4 sm:$0xff]   ;;  %v1264_v45 = vld [vmem:[#allocation10 + $0x120] sm:$0xff] }
  0x9a   :  { %v1291_v37 = vld [vmem:[#allocation10 + $0x1f8] sm:$0xff] }
  0x9b   :  { %648 = vmatpush1.bf16.msra.mxu1 %v2067_v50  ;;  %v1236_v50 = vld [vmem:[#allocation10 + $0x40] sm:$0xff]  ;;  %v2191_v38 = vld [vmem:[#allocation7 + $0x16c] ss:$16 sps:$4 sm:$0xff]  }
  0x9c   :  { %1131 = vmatpush1.bf16.msra.mxu0 %v2064_v48  ;;  %649 = vmatprep.subr.bf16.mxu1 %v2068_v51  ;;  %v2137_v48 = vld [vmem:[#allocation8 + $0x12c] ss:$16 sps:$4 sm:$0xff]   ;;  %v1238_v51 = vld [vmem:[#allocation10 + $0x50] sm:$0xff] }
  0x9d   :  { %1132 = vmatprep.subr.bf16.mxu0 %v2072_v53  ;;  %v1243_v53 = vld [vmem:[#allocation10 + $0x78] sm:$0xff] }
  0x9f   :  { %650 = vmatpush1.bf16.msra.mxu1 %v2073_v55  ;;  %v1829_v55 = vpack.c.bf16 %v1238_v51, %v1236_v50  ;;  %v2159_v50 = vld [vmem:[#allocation7 + $0x28] ss:$16 sps:$4 sm:$0xff]   ;;  %v2164_v51 = vld [vmem:[#allocation7 + $0x4c] ss:$16 sps:$4 sm:$0xff]  }
  0xa0   :  { %1133 = vmatpush1.bf16.msra.mxu0 %v2070_v54  ;;  %651 = vmatprep.subr.bf16.mxu1 %v2074_v56  ;;  %v2135_v54 = vld [vmem:[#allocation8 + $0x128] ss:$16 sps:$4 sm:$0xff]   ;;  %v2140_v56 = vld [vmem:[#allocation8 + $0x14c] ss:$16 sps:$4 sm:$0xff]  }
  0xa1   :  { %1134 = vmatprep.subr.bf16.mxu0 %v2078_v57 }
  0xa3   :  { %652 = vmatpush1.bf16.msra.mxu1 %v2079_v59  ;;  %v1242_v59 = vld [vmem:[#allocation10 + $0x70] sm:$0xff] }
  0xa4   :  { %1135 = vmatpush1.bf16.msra.mxu0 %v2076_v58  ;;  %653 = vmatprep.subr.bf16.mxu1 %v2080_v60  ;;  %v1240_v58 = vld [vmem:[#allocation10 + $0x60] sm:$0xff]  ;;  %v1245_v60 = vld [vmem:[#allocation10 + $0x88] sm:$0xff] }
  0xa5   :  { %1136 = vmatprep.subr.bf16.mxu0 %v2084_v61  ;;  %v1247_v61 = vld [vmem:[#allocation10 + $0x98] sm:$0xff] }
  0xa7   :  { %654 = vmatpush1.bf16.msra.mxu1 %v2085_v0  ;;  %v2143_v0 = vld [vmem:[#allocation8 + $0x16c] ss:$16 sps:$4 sm:$0xff]  }
  0xa8   :  { %1137 = vmatpush1.bf16.msra.mxu0 %v2082_v63  ;;  %655 = vmatprep.subr.bf16.mxu1 %v2086_v2  ;;  %v1833_v63 = vpack.c.bf16 %v1242_v59, %v1240_v58  ;;  %v1835_v2 = vpack.c.bf16 %v1247_v61, %v1245_v60  ;;  %v1269_v58 = vld [vmem:[#allocation10 + $0x148] sm:$0xff]  ;;  %v1271_v59 = vld [vmem:[#allocation10 + $0x158] sm:$0xff]  ;;  %v1268_v61 = vld [vmem:[#allocation10 + $0x140] sm:$0xff] }
  0xa9   :  { %1138 = vmatprep.subr.bf16.mxu0 %v2090_v3  ;;  %v1244_v3 = vld [vmem:[#allocation10 + $0x80] sm:$0xff]  ;;  %v1859_v60 = vpack.c.bf16 %v1271_v59, %v1269_v58 }
  0xab   :  { %656 = vmatpush1.bf16.msra.mxu1 %v2091_v5  ;;  %v1249_v5 = vld [vmem:[#allocation10 + $0xa8] sm:$0xff] }
  0xac   :  { %1139 = vmatpush1.bf16.msra.mxu0 %v2088_v4  ;;  %707 = vmatprep.subr.bf16.mxu1 %v2096_v6  ;;  %v1246_v4 = vld [vmem:[#allocation10 + $0x90] sm:$0xff]  ;;  %v1251_v6 = vld [vmem:[#allocation10 + $0xb8] sm:$0xff] }
  0xad   :  { %1140 = vmatprep.subr.bf16.mxu0 %v2099_v7  ;;  %v2141_v7 = vld [vmem:[#allocation8 + $0x168] ss:$16 sps:$4 sm:$0xff]  }
  0xae   :  { %658 = vmatmul.mubr.bf16.vlgmr.msra.gmra.mrb[0].mxu1 %v2516_v8 }
  0xaf   :  { %708 = vmatpush1.bf16.msra.mxu1 %v2094_v9  ;;  %739 = vmatprep.mubr.bf16.mxu1 %v1641_v52  ;;  %v1241_v52 = vld [vmem:[#allocation10 + $0x68] sm:$0xff]  ;;  %v1837_v9 = vpack.c.bf16 %v1246_v4, %v1244_v3  ;;  %v1275_v4 = vld [vmem:[#allocation10 + $0x178] sm:$0xff] }
  0xb0   :  { %1141 = vmatpush1.bf16.msra.mxu0 %v2097_v10  ;;  %709 = vmatprep.subr.bf16.mxu1 %v2102_v11  ;;  %v1831_v57 = vpack.c.bf16 %v1243_v53, %v1241_v52  ;;  %v2146_v10 = vld [vmem:[#allocation8 + $0x18c] ss:$16 sps:$4 sm:$0xff]   ;;  %v1839_v11 = vpack.c.bf16 %v1251_v6, %v1249_v5  ;;  %v2162_v52 = vld [vmem:[#allocation7 + $0x48] ss:$16 sps:$4 sm:$0xff]   ;;  %v1272_v6 = vld [vmem:[#allocation10 + $0x160] sm:$0xff] }
  0xb1   :  { %1142 = vmatprep.subr.bf16.mxu0 %v2105_v12  ;;  %v1248_v12 = vld [vmem:[#allocation10 + $0xa0] sm:$0xff]  ;;  %v2167_v53 = vld [vmem:[#allocation7 + $0x6c] ss:$16 sps:$4 sm:$0xff]  }
  0xb2   :  { %v1273_v3 = vld [vmem:[#allocation10 + $0x168] sm:$0xff] }
  0xb3   :  { %710 = vmatpush1.bf16.msra.mxu1 %v2100_v13  ;;  %v1250_v13 = vld [vmem:[#allocation10 + $0xb0] sm:$0xff]  ;;  %v1863_v5 = vpack.c.bf16 %v1275_v4, %v1273_v3  ;;  %v1200_v3 = vlaneseq }
  0xb4   :  { %1143 = vmatpush1.bf16.msra.mxu0 %v2103_v14  ;;  %711 = vmatprep.subr.bf16.mxu1 %v2108_v15  ;;  %v1253_v14 = vld [vmem:[#allocation10 + $0xc8] sm:$0xff]  ;;  %v1255_v15 = vld [vmem:[#allocation10 + $0xd8] sm:$0xff] }
  0xb5   :  { %1144 = vmatprep.subr.bf16.mxu0 %v2111_v16  ;;  %v2144_v16 = vld [vmem:[#allocation8 + $0x188] ss:$16 sps:$4 sm:$0xff]   ;;  %v2529_v4 = vshrl.u32 %v1200_v3, 7  ;;  %v1522_v3 = vld [vmem:[#allocation11 + $0x50] sm:$0xff] }
  0xb7   :  { %712 = vmatpush1.bf16.msra.mxu1 %v2106_v17  ;;  %v1841_v17 = vpack.c.bf16 %v1250_v13, %v1248_v12  ;;  %v1276_v12 = vld [vmem:[#allocation10 + $0x180] sm:$0xff]  ;;  %v1278_v13 = vld [vmem:[#allocation10 + $0x190] sm:$0xff] }
  0xb8   :  { %1145 = vmatpush1.bf16.msra.mxu0 %v2109_v18  ;;  %713 = vmatprep.subr.bf16.mxu1 %v2114_v19  ;;  %v2149_v18 = vld [vmem:[#allocation8 + $0x1ac] ss:$16 sps:$4 sm:$0xff]   ;;  %v1843_v19 = vpack.c.bf16 %v1255_v15, %v1253_v14 }
  0xb9   :  { %1146 = vmatprep.subr.bf16.mxu0 %v2117_v20  ;;  %v1252_v20 = vld [vmem:[#allocation10 + $0xc0] sm:$0xff]  ;;  %v1281_v15 = vld [vmem:[#allocation10 + $0x1a8] sm:$0xff] }
  0xbb   :  { %714 = vmatpush1.bf16.msra.mxu1 %v2112_v21  ;;  %v1254_v21 = vld [vmem:[#allocation10 + $0xd0] sm:$0xff] }
  0xbc   :  { %1147 = vmatpush1.bf16.msra.mxu0 %v2115_v22  ;;  %715 = vmatprep.subr.bf16.mxu1 %v2122_v23  ;;  %v1257_v22 = vld [vmem:[#allocation10 + $0xe8] sm:$0xff]  ;;  %v1259_v23 = vld [vmem:[#allocation10 + $0xf8] sm:$0xff] }
  0xbd   :  { %1820 = vmatprep.subr.bf16.mxu0 %v1819_v36 }
  0xbf   :  { %1149 = vmatmul.mubr.bf16.vlgmr.msra.gmra.mrb[8].mxu0 %v2519_v24  ;;  %716 = vmatpush1.bf16.msra.mxu1 %v2120_v25  ;;  %v2147_v25 = vld [vmem:[#allocation8 + $0x1a8] ss:$16 sps:$4 sm:$0xff]  }
  0xc0   :  { %717 = vmatprep.subr.bf16.mxu1 %v2125_v26  ;;  %1822 = vmatpush1.bf16.msra.mxu0 %v1821_v40  ;;  %v1845_v26 = vpack.c.bf16 %v1254_v21, %v1252_v20  ;;  %v1267_v40 = vld [vmem:[#allocation10 + $0x138] sm:$0xff]  ;;  %v1280_v21 = vld [vmem:[#allocation10 + $0x1a0] sm:$0xff] }
  0xc1   :  { %1824 = vmatprep.subr.bf16.mxu0 %v1823_v41  ;;  %v2153_v41 = vld [vmem:[#allocation8 + $0x1e8] ss:$16 sps:$4 sm:$0xff]   ;;  %v1855_v44 = vpack.c.bf16 %v1267_v40, %v1265_v39  ;;  %v1288_v40 = vld [vmem:[#allocation10 + $0x1e0] sm:$0xff] }
  0xc3   :  { %718 = vmatpush1.bf16.msra.mxu1 %v2123_v27  ;;  %v2152_v27 = vld [vmem:[#allocation8 + $0x1cc] ss:$16 sps:$4 sm:$0xff]  }
  0xc4   :  { %719 = vmatprep.subr.bf16.mxu1 %v2128_v28  ;;  %1826 = vmatpush1.bf16.msra.mxu0 %v1825_v47  ;;  %v1847_v28 = vpack.c.bf16 %v1259_v23, %v1257_v22  ;;  %v2156_v47 = vld [vmem:[#allocation7 + $0x8] ss:$16 sps:$4 sm:$0xff]   ;;  %v1282_v22 = vld [vmem:[#allocation10 + $0x1b0] sm:$0xff] }
  0xc5   :  { %1828 = vmatprep.subr.bf16.mxu0 %v1827_v49  ;;  %v2180_v23 = vld [vmem:[#allocation7 + $0x108] ss:$16 sps:$4 sm:$0xff]  }
  0xc7   :  { %720 = vmatpush1.bf16.msra.mxu1 %v2126_v29  ;;  %v1256_v29 = vld [vmem:[#allocation10 + $0xe0] sm:$0xff] }
  0xc8   :  { %721 = vmatprep.subr.bf16.mxu1 %v2131_v30  ;;  %1830 = vmatpush1.bf16.msra.mxu0 %v1829_v55  ;;  %v1258_v30 = vld [vmem:[#allocation10 + $0xf0] sm:$0xff]  ;;  %v2170_v55 = vld [vmem:[#allocation7 + $0x8c] ss:$16 sps:$4 sm:$0xff]  }
  0xc9   :  { %1832 = vmatprep.subr.bf16.mxu0 %v1831_v57  ;;  %v1849_v34 = vpack.c.bf16 %v1258_v30, %v1256_v29  ;;  %v2173_v57 = vld [vmem:[#allocation7 + $0xac] ss:$16 sps:$4 sm:$0xff]  }
  0xca   :  { %v1287_v29 = vld [vmem:[#allocation10 + $0x1d8] sm:$0xff] }
  0xcb   :  { %722 = vmatpush1.bf16.msra.mxu1 %v2129_v31  ;;  %v1261_v31 = vld [vmem:[#allocation10 + $0x108] sm:$0xff] }
  0xcc   :  { %723 = vmatprep.subr.bf16.mxu1 %v2134_v32  ;;  %1834 = vmatpush1.bf16.msra.mxu0 %v1833_v63  ;;  %v1263_v32 = vld [vmem:[#allocation10 + $0x118] sm:$0xff] }
  0xcd   :  { %1836 = vmatprep.subr.bf16.mxu0 %v1835_v2  ;;  %v1851_v36 = vpack.c.bf16 %v1263_v32, %v1261_v31  ;;  %v2179_v2 = vld [vmem:[#allocation7 + $0xec] ss:$16 sps:$4 sm:$0xff]   ;;  %v1284_v32 = vld [vmem:[#allocation10 + $0x1c0] sm:$0xff] }
  0xce   :  { %v2188_v30 = vld [vmem:[#allocation7 + $0x14c] ss:$16 sps:$4 sm:$0xff]  }
  0xcf   :  { %724 = vmatpush1.bf16.msra.mxu1 %v2132_v46  ;;  %v1266_v46 = vld [vmem:[#allocation10 + $0x130] sm:$0xff] }
  0xd0   :  { %725 = vmatprep.subr.bf16.mxu1 %v2137_v48  ;;  %1838 = vmatpush1.bf16.msra.mxu0 %v1837_v9  ;;  %v2161_v48 = vld [vmem:[#allocation7 + $0x2c] ss:$16 sps:$4 sm:$0xff]   ;;  %v1857_v49 = vpack.c.bf16 %v1266_v46, %v1264_v45  ;;  %v2192_v45 = vld [vmem:[#allocation7 + $0x188] ss:$16 sps:$4 sm:$0xff]  }
  0xd1   :  { %1840 = vmatprep.subr.bf16.mxu0 %v1839_v11  ;;  %v1277_v9 = vld [vmem:[#allocation10 + $0x188] sm:$0xff]  ;;  %v1279_v11 = vld [vmem:[#allocation10 + $0x198] sm:$0xff] }
  0xd2   :  { %v1867_v14 = vpack.c.bf16 %v1279_v11, %v1277_v9  ;;  %v2197_v46 = vld [vmem:[#allocation7 + $0x1ac] ss:$16 sps:$4 sm:$0xff]   ;;  %v1530_v11 = vld [vmem:[#allocation11 + $0x90] sm:$0xff] }
  0xd3   :  { %726 = vmatpush1.bf16.msra.mxu1 %v2135_v54  ;;  %v2165_v54 = vld [vmem:[#allocation7 + $0x68] ss:$16 sps:$4 sm:$0xff]  }
  0xd4   :  { %727 = vmatprep.subr.bf16.mxu1 %v2140_v56  ;;  %1842 = vmatpush1.bf16.msra.mxu0 %v1841_v17  ;;  %v2168_v56 = vld [vmem:[#allocation7 + $0x88] ss:$16 sps:$4 sm:$0xff]  }
  0xd5   :  { %1844 = vmatprep.subr.bf16.mxu0 %v1843_v19  ;;  %v2177_v17 = vld [vmem:[#allocation7 + $0xe8] ss:$16 sps:$4 sm:$0xff]   ;;  %v2182_v19 = vld [vmem:[#allocation7 + $0x10c] ss:$16 sps:$4 sm:$0xff]  }
  0xd7   :  { %728 = vmatpush1.bf16.msra.mxu1 %v2138_v62  ;;  %v1270_v62 = vld [vmem:[#allocation10 + $0x150] sm:$0xff] }
  0xd8   :  { %729 = vmatprep.subr.bf16.mxu1 %v2143_v0  ;;  %1846 = vmatpush1.bf16.msra.mxu0 %v1845_v26  ;;  %v1861_v63 = vpack.c.bf16 %v1270_v62, %v1268_v61  ;;  %v2174_v0 = vld [vmem:[#allocation7 + $0xc8] ss:$16 sps:$4 sm:$0xff]   ;;  %v2185_v26 = vld [vmem:[#allocation7 + $0x12c] ss:$16 sps:$4 sm:$0xff]  }
  0xd9   :  { %1848 = vmatprep.subr.bf16.mxu0 %v1847_v28  ;;  %v1285_v28 = vld [vmem:[#allocation10 + $0x1c8] sm:$0xff] }
  0xda   :  { %v1875_v31 = vpack.c.bf16 %v1287_v29, %v1285_v28  ;;  %v1534_v28 = vld [vmem:[#allocation11 + $0xb0] sm:$0xff]  ;;  %v1535_v29 = vld [vmem:[#allocation11 + $0xb8] sm:$0xff] }
  0xdb   :  { %730 = vmatpush1.bf16.msra.mxu1 %v2141_v7  ;;  %v1274_v7 = vld [vmem:[#allocation10 + $0x170] sm:$0xff] }
  0xdc   :  { %731 = vmatprep.subr.bf16.mxu1 %v2146_v10  ;;  %1850 = vmatpush1.bf16.msra.mxu0 %v1849_v34  ;;  %v1865_v10 = vpack.c.bf16 %v1274_v7, %v1272_v6  ;;  %v1529_v6 = vld [vmem:[#allocation11 + $0x88] sm:$0xff]  ;;  %v1512_v7 = vld [vmem:[#allocation11] sm:$0xff] }
  0xdd   :  { %1852 = vmatprep.subr.bf16.mxu0 %v1851_v36  ;;  %v1289_v36 = vld [vmem:[#allocation10 + $0x1e8] sm:$0xff] }
  0xde   :  { %v1879_v39 = vpack.c.bf16 %v1291_v37, %v1289_v36  ;;  %v1292_v37 = vld [vmem:[#allocation10 + $0x200] sm:$0xff] }
  0xdf   :  { %732 = vmatpush1.bf16.msra.mxu1 %v2144_v16  ;;  %v1283_v16 = vld [vmem:[#allocation10 + $0x1b8] sm:$0xff] }
  0xe0   :  { %733 = vmatprep.subr.bf16.mxu1 %v2149_v18  ;;  %1854 = vmatpush1.bf16.msra.mxu0 %v1853_v42  ;;  %v1869_v18 = vpack.c.bf16 %v1278_v13, %v1276_v12  ;;  %v1871_v20 = vpack.c.bf16 %v1283_v16, %v1281_v15  ;;  %v1531_v12 = vld [vmem:[#allocation11 + $0x98] sm:$0xff]  ;;  %v1202_v13 = vsub.s32 0, %v2529_v4  ;;  %v1514_v16 = vld [vmem:[#allocation11 + $0x10] sm:$0xff] }
  0xe1   :  { %1856 = vmatprep.subr.bf16.mxu0 %v1855_v44  ;;  %v2194_v44 = vld [vmem:[#allocation7 + $0x18c] ss:$16 sps:$4 sm:$0xff]   ;;  %v1951_v15 = vpack.c.bf16 %v1531_v12, %v1530_v11 }
  0xe2   :  { %v1305_v11 = vld [vmem:[#allocation10 + $0x268] sm:$0xff]  ;;  %v1307_v12 = vld [vmem:[#allocation10 + $0x278] sm:$0xff] }
  0xe3   :  { %734 = vmatpush1.bf16.msra.mxu1 %v2147_v25  ;;  %v1873_v25 = vpack.c.bf16 %v1282_v22, %v1280_v21  ;;  %v1533_v21 = vld [vmem:[#allocation11 + $0xa8] sm:$0xff] }
  0xe4   :  { %735 = vmatprep.subr.bf16.mxu1 %v2152_v27  ;;  %1858 = vmatpush1.bf16.msra.mxu0 %v1857_v49  ;;  %v2183_v27 = vld [vmem:[#allocation7 + $0x128] ss:$16 sps:$4 sm:$0xff]  }
  0xe5   :  { %1860 = vmatprep.subr.bf16.mxu0 %v1859_v60  ;;  %v2198_v49 = vld [vmem:[#allocation7 + $0x1c8] ss:$16 sps:$4 sm:$0xff]  }
  0xe7   :  { %736 = vmatpush1.bf16.msra.mxu1 %v2150_v33  ;;  %v1286_v33 = vld [vmem:[#allocation10 + $0x1d0] sm:$0xff] }
  0xe8   :  { %737 = vmatprep.subr.bf16.mxu1 %v2155_v35  ;;  %1862 = vmatpush1.bf16.msra.mxu0 %v1861_v63  ;;  %v1877_v34 = vpack.c.bf16 %v1286_v33, %v1284_v32  ;;  %v2186_v35 = vld [vmem:[#allocation7 + $0x148] ss:$16 sps:$4 sm:$0xff]  }
  0xe9   :  { %1864 = vmatprep.subr.bf16.mxu0 %v1863_v5  ;;  %v1528_v5 = vld [vmem:[#allocation11 + $0x80] sm:$0xff] }
  0xea   :  { %v1947_v9 = vpack.c.bf16 %v1529_v6, %v1528_v5  ;;  %v1523_v5 = vld [vmem:[#allocation11 + $0x58] sm:$0xff] }
  0xeb   :  { %738 = vmatpush1.bf16.msra.mxu1 %v2153_v41  ;;  %v1290_v41 = vld [vmem:[#allocation10 + $0x1f0] sm:$0xff] }
  0xec   :  { %1157 = vmatprep.subr.bf16.mxu1 %v2158_v43  ;;  %1866 = vmatpush1.bf16.msra.mxu0 %v1865_v10  ;;  %v1881_v42 = vpack.c.bf16 %v1290_v41, %v1288_v40  ;;  %v2189_v43 = vld [vmem:[#allocation7 + $0x168] ss:$16 sps:$4 sm:$0xff]  }
  0xed   :  { %1868 = vmatprep.subr.bf16.mxu0 %v1867_v14  ;;  %v1513_v10 = vld [vmem:[#allocation11 + $0x8] sm:$0xff]  ;;  %v1519_v40 = vld [vmem:[#allocation11 + $0x38] sm:$0xff] }
  0xee   :  { %740 = vmatmul.mubr.bf16.vlgmr.msra.gmra.mrb[4].mxu1 %v2516_v8  ;;  %v2171_v8 = vld [vmem:[#allocation7 + $0xa8] ss:$16 sps:$4 sm:$0xff]   ;;  %v1949_v14 = vpack.c.bf16 %v1513_v10, %v1512_v7  ;;  %v1302_v7 = vld [vmem:[#allocation10 + $0x250] sm:$0xff] }
  0xef   :  { %1158 = vmatpush1.bf16.msra.mxu1 %v2156_v47  ;;  %1189 = vmatprep.mubr.bf16.mxu1 %v2513_v1  ;;  %v2176_v1 = vld [vmem:[#allocation7 + $0xcc] ss:$16 sps:$4 sm:$0xff]   ;;  %v2195_v47 = vld [vmem:[#allocation7 + $0x1a8] ss:$16 sps:$4 sm:$0xff]  }
  0xf0   :  { %1159 = vmatprep.subr.bf16.mxu1 %v2161_v48  ;;  %1870 = vmatpush1.bf16.msra.mxu0 %v1869_v18  ;;  %v2200_v48 = vld [vmem:[#allocation7 + $0x1cc] ss:$16 sps:$4 sm:$0xff]   ;;  %v1532_v18 = vld [vmem:[#allocation11 + $0xa0] sm:$0xff] }
  0xf1   :  { %1872 = vmatprep.subr.bf16.mxu0 %v1871_v20  ;;  %v1206_v20 = vsub.s32 1, %v2529_v4  ;;  %v1541_v10 = vld [vmem:[#allocation11 + $0xe8] sm:$0xff] }
  0xf3   :  { %1160 = vmatpush1.bf16.msra.mxu1 %v2159_v50  ;;  %v2203_v50 = vld [vmem:[#allocation7 + $0x1ec] ss:$16 sps:$4 sm:$0xff]  }
  0xf4   :  { %1161 = vmatprep.subr.bf16.mxu1 %v2164_v51  ;;  %1874 = vmatpush1.bf16.msra.mxu0 %v1873_v25  ;;  %v2201_v51 = vld [vmem:[#allocation7 + $0x1e8] ss:$16 sps:$4 sm:$0xff]   ;;  %v1516_v25 = vld [vmem:[#allocation11 + $0x20] sm:$0xff] }
  0xf5   :  { %1876 = vmatprep.subr.bf16.mxu0 %v1875_v31 }
  0xf7   :  { %1162 = vmatpush1.bf16.msra.mxu1 %v2162_v52  ;;  %v1293_v52 = vld [vmem:[#allocation10 + $0x208] sm:$0xff] }
  0xf8   :  { %1163 = vmatprep.subr.bf16.mxu1 %v2167_v53  ;;  %1878 = vmatpush1.bf16.msra.mxu0 %v1877_v34  ;;  %v1295_v53 = vld [vmem:[#allocation10 + $0x218] sm:$0xff] }
  0xf9   :  { %1880 = vmatprep.subr.bf16.mxu0 %v1879_v39  ;;  %v1518_v39 = vld [vmem:[#allocation11 + $0x30] sm:$0xff] }
  0xfb   :  { %1164 = vmatpush1.bf16.msra.mxu1 %v2165_v54  ;;  %v1883_v54 = vpack.c.bf16 %v1295_v53, %v1293_v52  ;;  %v1296_v52 = vld [vmem:[#allocation10 + $0x220] sm:$0xff] }
  0xfc   :  { %1165 = vmatprep.subr.bf16.mxu1 %v2170_v55  ;;  %1882 = vmatpush1.bf16.msra.mxu0 %v1881_v42 }
  0xfd   :  { %1884 = vmatprep.subr.bf16.mxu0 %v1883_v54  ;;  %v1520_v54 = vld [vmem:[#allocation11 + $0x40] sm:$0xff] }
  0xff   :  { %1166 = vmatpush1.bf16.msra.mxu1 %v2168_v56 }
 0x100   :  { %1167 = vmatprep.subr.bf16.mxu1 %v2173_v57 }
 0x103   :  { %1168 = vmatpush1.bf16.msra.mxu1 %v2171_v8 }
 0x104   :  { %1169 = vmatprep.subr.bf16.mxu1 %v2176_v1 }
 0x107   :  { %1170 = vmatpush1.bf16.msra.mxu1 %v2174_v0 }
 0x108   :  { %1171 = vmatprep.subr.bf16.mxu1 %v2179_v2 }
 0x10b   :  { %1172 = vmatpush1.bf16.msra.mxu1 %v2177_v17  ;;  %v1515_v17 = vld [vmem:[#allocation11 + $0x18] sm:$0xff] }
 0x10c   :  { %1173 = vmatprep.subr.bf16.mxu1 %v2182_v19  ;;  %v2535_v19 = vld [vmem:[%s2576_s4] sm:$0xf]  ;;  %v1953_v22 = vpack.c.bf16 %v1515_v17, %v1514_v16  ;;  %v1895_v17 = vpack.c.bf16 %v1307_v12, %v1305_v11  ;;  %v1343_v11 = vld [vmem:[#allocation10 + $0x398] sm:$0xff] }
 0x10d   :  { %v1207_v31 = vrot.slane %v2535_v19, %v1206_v20 }
 0x10f   :  { %1174 = vmatpush1.bf16.msra.mxu1 %v2180_v23  ;;  %v1955_v23 = vpack.c.bf16 %v1533_v21, %v1532_v18  ;;  %v1304_v18 = vld [vmem:[#allocation10 + $0x260] sm:$0xff]  ;;  %v1306_v21 = vld [vmem:[#allocation10 + $0x270] sm:$0xff] }
 0x110   :  { %1175 = vmatprep.subr.bf16.mxu1 %v2185_v26  ;;  %v1517_v26 = vld [vmem:[#allocation11 + $0x28] sm:$0xff] }
 0x111   :  { %v1957_v34 = vpack.c.bf16 %v1517_v26, %v1516_v25  ;;  %v1897_v25 = vpack.c.bf16 %v1306_v21, %v1304_v18 }
 0x113   :  { %1176 = vmatpush1.bf16.msra.mxu1 %v2183_v27  ;;  %v1203_v27 = vrot.slane %v2535_v19, %v1202_v13 }
 0x114   :  { %1177 = vmatprep.subr.bf16.mxu1 %v2188_v30 }
 0x117   :  { %1178 = vmatpush1.bf16.msra.mxu1 %v2186_v35 }
 0x118   :  { %1179 = vmatprep.subr.bf16.mxu1 %v2191_v38  ;;  %v1959_v38 = vpack.c.bf16 %v1535_v29, %v1534_v28  ;;  %v1310_v28 = vld [vmem:[#allocation10 + $0x290] sm:$0xff]  ;;  %v1313_v29 = vld [vmem:[#allocation10 + $0x2a8] sm:$0xff] }
 0x11b   :  { %1180 = vmatpush1.bf16.msra.mxu1 %v2189_v43  ;;  %v1294_v43 = vld [vmem:[#allocation10 + $0x210] sm:$0xff] }
 0x11c   :  { %1181 = vmatprep.subr.bf16.mxu1 %v2194_v44  ;;  %v1536_v44 = vld [vmem:[#allocation11 + $0xc0] sm:$0xff] }
 0x11f   :  { %1182 = vmatpush1.bf16.msra.mxu1 %v2192_v45  ;;  %v1537_v45 = vld [vmem:[#allocation11 + $0xc8] sm:$0xff] }
 0x120   :  { %1183 = vmatprep.subr.bf16.mxu1 %v2197_v46  ;;  %v1963_v53 = vpack.c.bf16 %v1537_v45, %v1536_v44  ;;  %v1320_v45 = vld [vmem:[#allocation10 + $0x2e0] sm:$0xff] }
 0x123   :  { %1184 = vmatpush1.bf16.msra.mxu1 %v2195_v47  ;;  %v1297_v47 = vld [vmem:[#allocation10 + $0x228] sm:$0xff] }
 0x124   :  { %1185 = vmatprep.subr.bf16.mxu1 %v2200_v48  ;;  %v1299_v48 = vld [vmem:[#allocation10 + $0x238] sm:$0xff] }
 0x127   :  { %1186 = vmatpush1.bf16.msra.mxu1 %v2198_v49  ;;  %v1961_v49 = vpack.c.bf16 %v1519_v40, %v1518_v39  ;;  %v1316_v39 = vld [vmem:[#allocation10 + $0x2c0] sm:$0xff]  ;;  %v1318_v40 = vld [vmem:[#allocation10 + $0x2d0] sm:$0xff] }
 0x128   :  { %1187 = vmatprep.subr.bf16.mxu1 %v2203_v50 }
 0x12b   :  { %1188 = vmatpush1.bf16.msra.mxu1 %v2201_v51  ;;  %v1885_v51 = vpack.c.bf16 %v1294_v43, %v1292_v37  ;;  %v1909_v43 = vpack.c.bf16 %v1318_v40, %v1316_v39  ;;  %v1352_v39 = vld [vmem:[#allocation10 + $0x3e0] sm:$0xff]  ;;  %v1354_v40 = vld [vmem:[#allocation10 + $0x3f0] sm:$0xff] }
 0x12c   :  { %1948 = vmatprep.subr.bf16.mxu1 %v1947_v9  ;;  %v1540_v9 = vld [vmem:[#allocation11 + $0xe0] sm:$0xff] }
 0x12d   :  { %v1971_v16 = vpack.c.bf16 %v1541_v10, %v1540_v9  ;;  %v1341_v10 = vld [vmem:[#allocation10 + $0x388] sm:$0xff] }
 0x12e   :  { %1190 = vmatmul.mubr.bf16.vlgmr.msra.gmra.mrb[8].mxu1 %v2519_v24  ;;  %v1931_v21 = vpack.c.bf16 %v1343_v11, %v1341_v10 }
 0x12f   :  { %1950 = vmatpush3.bf16.msra.mxu1 %v1949_v14  ;;  %v1969_v14 = vpack.c.bf16 %v1523_v5, %v1522_v3 }
 0x130   :  { %1952 = vmatprep.subr.bf16.mxu1 %v1951_v15 }
 0x133   :  { %1954 = vmatpush3.bf16.msra.mxu1 %v1953_v22  ;;  %v1309_v22 = vld [vmem:[#allocation10 + $0x288] sm:$0xff] }
 0x134   :  { %1956 = vmatprep.subr.bf16.mxu1 %v1955_v23  ;;  %v1311_v23 = vld [vmem:[#allocation10 + $0x298] sm:$0xff] }
 0x135   :  { %v1899_v26 = vpack.c.bf16 %v1311_v23, %v1309_v22  ;;  %v1340_v22 = vld [vmem:[#allocation10 + $0x380] sm:$0xff]  ;;  %v1342_v23 = vld [vmem:[#allocation10 + $0x390] sm:$0xff] }
 0x137   :  { %1958 = vmatpush3.bf16.msra.mxu1 %v1957_v34  ;;  %v1314_v34 = vld [vmem:[#allocation10 + $0x2b0] sm:$0xff] }
 0x138   :  { %1960 = vmatprep.subr.bf16.mxu1 %v1959_v38 }
 0x13b   :  { %1962 = vmatpush3.bf16.msra.mxu1 %v1961_v49 }
 0x13c   :  { %1964 = vmatprep.subr.bf16.mxu1 %v1963_v53  ;;  %v1329_v53 = vld [vmem:[#allocation10 + $0x328] sm:$0xff] }
 0x14a   :  { %v700_v55 = vpop.f32.mrb[0].mxu0 }
 0x14b   :  { %v702_v56 = vpop.f32.mrb[1].mxu0 }
 0x14c   :  { %v704_v57 = vpop.f32.mrb[2].mxu0 }
 0x14d   :  { %v705_v8 = vpop.f32.mrb[3].mxu0  ;;  %v1887_v57 = vpack.c.bf16 %v1299_v48, %v1297_v47  ;;  %v1325_v47 = vld [vmem:[#allocation10 + $0x308] sm:$0xff]  ;;  %v1327_v48 = vld [vmem:[#allocation10 + $0x318] sm:$0xff] }
 0x14e   :  { %v1298_v8 = vld [vmem:[#allocation10 + $0x230] sm:$0xff] }
 0x152   :  { %v2525_v58 = vpop.f32.mrb[4].mxu0 }
 0x153   :  { %v2527_v59 = vpop.f32.mrb[5].mxu0 }
 0x154   :  { %v786_v1 = vpop.f32.mrb[6].mxu0 }
 0x155   :  { %v787_v60 = vpop.f32.mrb[7].mxu0  ;;  %v1538_v1 = vld [vmem:[#allocation11 + $0xd0] sm:$0xff] }
 0x156   :  { %v1539_v60 = vld [vmem:[#allocation11 + $0xd8] sm:$0xff] }
 0x181   :  { %v659_v61 = vpop.f32.mrb[0].mxu1 }
 0x182   :  { %v701_v62 = vadd.f32 %v700_v55, %v659_v61  ;;  %v661_v63 = vpop.f32.mrb[1].mxu1  ;;  %v1521_v55 = vld [vmem:[#allocation11 + $0x48] sm:$0xff] }
 0x183   :  { %v703_v0 = vadd.f32 %v702_v56, %v661_v63  ;;  %v663_v2 = vpop.f32.mrb[2].mxu1  ;;  %v1301_v61 = vld [vmem:[#allocation10 + $0x248] sm:$0xff]  ;;  %v1965_v63 = vpack.c.bf16 %v1521_v55, %v1520_v54  ;;  %v1331_v54 = vld [vmem:[#allocation10 + $0x338] sm:$0xff] }
 0x184   :  { %v664_v24 = vpop.f32.mrb[3].mxu1  ;;  %v1300_v2 = vld [vmem:[#allocation10 + $0x240] sm:$0xff] }
 0x185   :  { %v1967_v24 = vpack.c.bf16 %v1539_v60, %v1538_v1  ;;  %1966 = vmatpush3.bf16.msra.mxu1 %v1965_v63  ;;  %v1893_v15 = vpack.c.bf16 %v1302_v7, %v1300_v2  ;;  %v1333_v1 = vld [vmem:[#allocation10 + $0x348] sm:$0xff]  ;;  %v1335_v60 = vld [vmem:[#allocation10 + $0x358] sm:$0xff]  ;;  %v1332_v63 = vld [vmem:[#allocation10 + $0x340] sm:$0xff] }
 0x186   :  { %v1337_v2 = vld [vmem:[#allocation10 + $0x368] sm:$0xff]  ;;  %v1338_v7 = vld [vmem:[#allocation10 + $0x370] sm:$0xff] }
 0x187   :  { %1968 = vmatprep.subr.bf16.mxu1 %v1967_v24  ;;  %v1339_v24 = vld [vmem:[#allocation10 + $0x378] sm:$0xff] }
 0x188   :  { %v1927_v5 = vpack.c.bf16 %v1339_v24, %v1337_v2 }
 0x189   :  { %1970 = vmatpush3.bf16.msra.mxu1 %v1969_v14 }
 0x18a   :  { %1972 = vmatprep.subr.bf16.mxu1 %v1971_v16 }
 0x192   :  { %v1150_v30 = vpop.f32.mrb[8].mxu0 }
 0x193   :  { %v1151_v32 = vadd.f32 %v1150_v30, %v701_v62  ;;  %v1152_v33 = vpop.f32.mrb[9].mxu0  ;;  %v1303_v62 = vld [vmem:[#allocation10 + $0x258] sm:$0xff] }
 0x194   :  { %v1153_v35 = vadd.f32 %v1152_v33, %v703_v0  ;;  %v1154_v36 = vpop.f32.mrb[10].mxu0  ;;  %v1889_v0 = vpack.c.bf16 %v1298_v8, %v1296_v52  ;;  %v1891_v6 = vpack.c.bf16 %v1303_v62, %v1301_v61  ;;  %v1315_v30 = vld [vmem:[#allocation10 + $0x2b8] sm:$0xff]  ;;  %v1312_v33 = vld [vmem:[#allocation10 + $0x2a0] sm:$0xff]  ;;  %v1326_v52 = vld [vmem:[#allocation10 + $0x310] sm:$0xff]  ;;  %v1923_v62 = vpack.c.bf16 %v1335_v60, %v1333_v1 }
 0x195   :  { %v1220_v41 = vadd.f32 %v1203_v27, %v1151_v32  ;;  %v1155_v42 = vpop.f32.mrb[11].mxu0  ;;  %v1308_v27 = vld [vmem:[#allocation10 + $0x280] sm:$0xff]  ;;  %v1903_v32 = vpack.c.bf16 %v1315_v30, %v1313_v29  ;;  %v1319_v36 = vld [vmem:[#allocation10 + $0x2d8] sm:$0xff]  ;;  %v1905_v37 = vpack.c.bf16 %v1314_v34, %v1312_v33  ;;  %v1330_v8 = vld [vmem:[#allocation10 + $0x330] sm:$0xff] }
 0x196   :  { %v1221_v46 = vadd.f32 %v1207_v31, %v1153_v35  ;;  %v1901_v31 = vpack.c.bf16 %v1310_v28, %v1308_v27  ;;  %v1317_v35 = vld [vmem:[#allocation10 + $0x2c8] sm:$0xff]  ;;  %v1323_v42 = vld [vmem:[#allocation10 + $0x2f8] sm:$0xff]  ;;  %v1933_v27 = vpack.c.bf16 %v1342_v23, %v1340_v22  ;;  %v1344_v29 = vld [vmem:[#allocation10 + $0x3a0] sm:$0xff] }
 0x197   :  { %v1224_v56 = vmax.f32 %v1220_v41, 0.0  ;;  %v1907_v38 = vpack.c.bf16 %v1319_v36, %v1317_v35  ;;  %v1321_v41 = vld [vmem:[#allocation10 + $0x2e8] sm:$0xff]  ;;  %v1346_v30 = vld [vmem:[#allocation10 + $0x3b0] sm:$0xff]  ;;  %v1348_v33 = vld [vmem:[#allocation10 + $0x3c0] sm:$0xff] }
 0x198   :  { %v1225_v50 = vmax.f32 %v1221_v46, 0.0  ;;  %v1911_v44 = vpack.c.bf16 %v1323_v42, %v1321_v41  ;;  %v1322_v46 = vld [vmem:[#allocation10 + $0x2f0] sm:$0xff]  ;;  %v1353_v35 = vld [vmem:[#allocation10 + $0x3e8] sm:$0xff]  ;;  %v1355_v36 = vld [vmem:[#allocation10 + $0x3f8] sm:$0xff]  ;;  %v1945_v41 = vpack.c.bf16 %v1354_v40, %v1352_v39  ;;  %v1210_v42 = vsub.s32 2, %v2529_v4 }
 0x199   :  { %v1913_v49 = vpack.c.bf16 %v1322_v46, %v1320_v45  ;;  %v1350_v34 = vld [vmem:[#allocation10 + $0x3d0] sm:$0xff]  ;;  %v1543_v60 = vld [vmem:[#allocation11 + $0xf8] sm:$0xff] }
 0x19a   :  { %1432 = vmatprep.mubr.f32.mxu0 %v1225_v50  ;;  %v1915_v50 = vpack.c.bf16 %v1327_v48, %v1325_v47  ;;  %v1542_v1 = vld [vmem:[#allocation11 + $0xf0] sm:$0xff] }
 0x19b   :  { %1433 = vmatmul.mubr.f32.vlgmr.msra.gmra.mrb[12].mxu0 %v1224_v56  ;;  %v1919_v56 = vpack.c.bf16 %v1331_v54, %v1329_v53 }
 0x19c   :  { %1886 = vmatpush1.bf16.msra.mxu0 %v1885_v51  ;;  %v1324_v51 = vld [vmem:[#allocation10 + $0x300] sm:$0xff] }
 0x19d   :  { %1888 = vmatprep.subr.bf16.mxu0 %v1887_v57  ;;  %v1917_v55 = vpack.c.bf16 %v1326_v52, %v1324_v51  ;;  %v1328_v57 = vld [vmem:[#allocation10 + $0x320] sm:$0xff] }
 0x19e   :  { %v1921_v61 = vpack.c.bf16 %v1330_v8, %v1328_v57  ;;  %v1525_v57 = vld [vmem:[#allocation11 + $0x68] sm:$0xff] }
 0x1a0   :  { %1890 = vmatpush1.bf16.msra.mxu0 %v1889_v0  ;;  %v1334_v0 = vld [vmem:[#allocation10 + $0x350] sm:$0xff] }
 0x1a1   :  { %1892 = vmatprep.subr.bf16.mxu0 %v1891_v6  ;;  %v1925_v3 = vpack.c.bf16 %v1334_v0, %v1332_v63  ;;  %v1336_v6 = vld [vmem:[#allocation10 + $0x360] sm:$0xff]  ;;  %v1356_v0 = vld [vmem:[%s2578_s6] sm:$0x3]  ;;  %s2379_s6 = smov [#allocation13]  }
 0x1a2   :  { %v1361_v2 = vrot.slane %v1356_v0, %v1202_v13  ;;  %v1365_v24 = vrot.slane %v1356_v0, %v1206_v20  ;;  %s1628_s19 = sshll.u32 %s2379_s6, 4  ;;  %s1629_s19 = int_to_ptr.vmem [resolvable:$true] %s1628_s19 }
 0x1a3   :  { %s2336_s20 = scalar_lea.vmem %s1629_s19, 128  ;;  %p2341_p7 = scmp.lt.s32.totalorder %s1629_s19, %s1629_s19 }
 0x1a4   :  { %1894 = vmatpush1.bf16.msra.mxu0 %v1893_v15  ;;  %p2337_p6 = scmp.ne.s32.totalorder %s1629_s19, %s2336_s20  ;;  %p2342_p8 = scmp.lt.s32.totalorder %s2336_s20, %s2336_s20 }
 0x1a5   :  { %1896 = vmatprep.subr.bf16.mxu0 %v1895_v17  ;;  %v1929_v17 = vpack.c.bf16 %v1338_v7, %v1336_v6 }
 0x1a6   :  { %p2343_p9 = por %p2342_p8, %p2341_p7 }
 0x1a8   :  { %1898 = vmatpush1.bf16.msra.mxu0 %v1897_v25  ;;  %v1345_v25 = vld [vmem:[#allocation10 + $0x3a8] sm:$0xff]  ;;  %p2344_p10 = pnand %p2343_p9, %p2337_p6 }
 0x1a9   :  { %1900 = vmatprep.subr.bf16.mxu0 %v1899_v26  ;;  %v1347_v26 = vld [vmem:[#allocation10 + $0x3b8] sm:$0xff] }
 0x1aa   :  { %v1935_v28 = vpack.c.bf16 %v1347_v26, %v1345_v25 }
 0x1ac   :  { %1902 = vmatpush1.bf16.msra.mxu0 %v1901_v31  ;;  %v1351_v31 = vld [vmem:[#allocation10 + $0x3d8] sm:$0xff] }
 0x1ad   :  { %1904 = vmatprep.subr.bf16.mxu0 %v1903_v32 }
 0x1b0   :  { %1906 = vmatpush1.bf16.msra.mxu0 %v1905_v37  ;;  %v1941_v37 = vpack.c.bf16 %v1350_v34, %v1348_v33 }
 0x1b1   :  { %1908 = vmatprep.subr.bf16.mxu0 %v1907_v38  ;;  %v1943_v38 = vpack.c.bf16 %v1355_v36, %v1353_v35 }
 0x1b4   :  { %1910 = vmatpush1.bf16.msra.mxu0 %v1909_v43  ;;  %v1214_v43 = vsub.s32 3, %v2529_v4 }
 0x1b5   :  { %1912 = vmatprep.subr.bf16.mxu0 %v1911_v44  ;;  %v1211_v44 = vrot.slane %v2535_v19, %v1210_v42 }
 0x1b6   :  { %v1215_v46 = vrot.slane %v2535_v19, %v1214_v43  ;;  %v1527_v19 = vld [vmem:[#allocation11 + $0x78] sm:$0xff] }
 0x1b8   :  { %1914 = vmatpush1.bf16.msra.mxu0 %v1913_v49 }
 0x1b9   :  { %1916 = vmatprep.subr.bf16.mxu0 %v1915_v50 }
 0x1bc   :  { %1918 = vmatpush1.bf16.msra.mxu0 %v1917_v55 }
 0x1bd   :  { %1920 = vmatprep.subr.bf16.mxu0 %v1919_v56  ;;  %v1524_v56 = vld [vmem:[#allocation11 + $0x60] sm:$0xff] }
 0x1be   :  { %v1973_v8 = vpack.c.bf16 %v1525_v57, %v1524_v56 }
 0x1c0   :  { %1922 = vmatpush1.bf16.msra.mxu0 %v1921_v61  ;;  %1974 = vmatpush3.bf16.msra.mxu1 %v1973_v8  ;;  %v1975_v61 = vpack.c.bf16 %v1543_v60, %v1542_v1 }
 0x1c1   :  { %1924 = vmatprep.subr.bf16.mxu0 %v1923_v62  ;;  %v741_v9 = vpop.f32.mrb[4].mxu1  ;;  %v1526_v62 = vld [vmem:[#allocation11 + $0x70] sm:$0xff] }
 0x1c2   :  { %v783_v12 = vadd.f32 %v2525_v58, %v741_v9  ;;  %v743_v14 = vpop.f32.mrb[5].mxu1  ;;  %v1349_v58 = vld [vmem:[#allocation10 + $0x3c8] sm:$0xff]  ;;  %v1977_v63 = vpack.c.bf16 %v1527_v19, %v1526_v62  ;;  %1976 = vmatprep.subr.bf16.mxu1 %v1975_v61 }
 0x1c3   :  { %v785_v15 = vadd.f32 %v2527_v59, %v743_v14  ;;  %v745_v16 = vpop.f32.mrb[6].mxu1  ;;  %v1937_v59 = vpack.c.bf16 %v1346_v30, %v1344_v29  ;;  %v1939_v32 = vpack.c.bf16 %v1351_v31, %v1349_v58 }
 0x1c4   :  { %1926 = vmatpush1.bf16.msra.mxu0 %v1925_v3  ;;  %v746_v18 = vpop.f32.mrb[7].mxu1  ;;  %1978 = vmatpush3.bf16.msra.mxu1 %v1977_v63 }
 0x1c5   :  { %1928 = vmatprep.subr.bf16.mxu0 %v1927_v5 }
 0x1c8   :  { %1930 = vmatpush1.bf16.msra.mxu0 %v1929_v17 }
 0x1c9   :  { %1932 = vmatprep.subr.bf16.mxu0 %v1931_v21 }
 0x1cc   :  { %1934 = vmatpush1.bf16.msra.mxu0 %v1933_v27 }
 0x1cd   :  { %1936 = vmatprep.subr.bf16.mxu0 %v1935_v28 }
 0x1d0   :  { %1938 = vmatpush1.bf16.msra.mxu0 %v1937_v59 }
 0x1d1   :  { %1940 = vmatprep.subr.bf16.mxu0 %v1939_v32 }
 0x1d4   :  { %1942 = vmatpush1.bf16.msra.mxu0 %v1941_v37 }
 0x1d5   :  { %1944 = vmatprep.subr.bf16.mxu0 %v1943_v38 }
 0x1d8   :  { %1946 = vmatpush1.bf16.msra.mxu0 %v1945_v41 }
 0x201   :  { %v1191_v45 = vpop.f32.mrb[8].mxu1 }
 0x202   :  { %v1192_v47 = vadd.f32 %v1191_v45, %v783_v12  ;;  %v1193_v48 = vpop.f32.mrb[9].mxu1  ;;  %v1783_v12 = vld [vmem:[%s2580_s8] ss:$0 sm:$0xff] }
 0x203   :  { %v1194_v49 = vadd.f32 %v1193_v48, %v785_v15  ;;  %v1195_v50 = vpop.f32.mrb[10].mxu1 }
 0x204   :  { %v1222_v51 = vadd.f32 %v1211_v44, %v1192_v47  ;;  %v1196_v52 = vpop.f32.mrb[11].mxu1 }
 0x205   :  { %v1223_v53 = vadd.f32 %v1215_v46, %v1194_v49 }
 0x206   :  { %v1226_v55 = vmax.f32 %v1222_v51, 0.0 }
 0x207   :  { %v1227_v54 = vmax.f32 %v1223_v53, 0.0 }
 0x209   :  { %1503 = vmatprep.mubr.f32.mxu0 %v1227_v54 }
 0x20a   :  { %1504 = vmatmul.mubr.f32.vlgmr.msra.gmra.mrb[12].mxu0 %v1226_v55 }
 0x2dd   :  { %v1505_v3 = vpop.f32.mrb[12].mxu0 }
 0x2de   :  { %v1979_v5 = vadd.f32 %v1505_v3, %v1361_v2  ;;  %v1507_v6 = vpop.f32.mrb[13].mxu0 }
 0x2df   :  { %v1980_v7 = vadd.f32 %v1507_v6, %v1365_v24 }
 0x2e0   :  { %v1510_v10 = vmax.f32 %v1979_v5, 0.0 }
 0x2e1   :  { %v1511_v9 = vmax.f32 %v1980_v7, 0.0 }
 0x2e3   :  { %1615 = vmatprep.mubr.f32.mxu1 %v1511_v9 }
 0x2e4   :  { %1616 = vmatmul.mubr.f32.vlgmr.msra.gmra.mrb[12].mxu1 %v1510_v10 }
 0x3b7   :  { %v1816_v11 = vpop.f32.mrb[12].mxu1 }
 0x3b8   :  { %v1817_v14 = vpop.f32.mrb[13].mxu1 }
 0x3b9   :  { %v1818_v13 = vadd.f32 %v1817_v14, %v1816_v11 }
 0x3bb   :  { %v1618_v15 = vadd.f32 %v1818_v13, %v1783_v12 }
 0x3bd   :  { %1621 = vst [vmem:[#allocation13] sm:$0xff] %v1618_v15 }
 0x3be   :  { %2347 = shalt.err (!%p2344_p10)
}
 0x3bf   :  { %s2348_s3 = scalar_lea.hbm %s2581_s9, 128 }
 0x3c0   :  { %p2349_p11 = scmp.ne.s32.totalorder %s2581_s9, %s2348_s3  ;;  %p2352_p12 = scmp.lt.u32.totalorder %s2348_s3, %s2581_s9 }
 0x3c2   :  { %p2354_p13 = pnand %p2352_p12, %p2349_p11 }
 0x3c4   :  { %2357 = shalt.err (!%p2354_p13)
}
 0x3c5   :  { %1631 = dma.vmem_to_hbm [thread:$0]  %s1629_s19, 128, %s2581_s9, [#allocation4]  }
 0x3c6   :  { %2366 = dma.done.wait [#allocation4], 128  }
 0x3c7   :  { %2367 = vsyncadd [#allocation4], 4294967168 }
 0x3c8   :  { %1635 = vsyncpa [#allocation3], 1 }
 0x3c9   :  { %1636 = vsyncpa [#allocation6], 1 }
 0x3ca   :  { %1637 = vsyncpa [#allocation9], 1 }
 0x3cb   :  { %1638 = vsyncpa [#allocation12], 1 }
 0x3cc   :  { %1639 = vsyncpa [#allocation4], 1 }

</bundles_post_ra>
